<compile_context>
chip_gen: v5e
topology: v5e:2x2
jax: 0.10.0
libtpu: 0.0.40
codegen_flags: <defaults>
</compile_context>

<pallas_src>
import jax
import jax.numpy as jnp
from jax.experimental import pallas as pl
from jax.experimental.pallas import tpu as pltpu


def rnn_forward_seq(x, h0, w_ih, b_ih, w_io, b_io, *, b_tile=None):
    """Run the char-RNN over a whole sequence in one Pallas kernel.

    x     : (T, B, I)   float32 one-hot characters
    h0    : (B, H)      float32 initial hidden
    w_ih  : (I+H, H)    float32 (pre-transposed: in_features x out_features)
    b_ih  : (H,)        float32
    w_io  : (I+H, O)    float32 (pre-transposed)
    b_io  : (O,)        float32

    Returns (log_probs (T, B, O), hiddens (T, B, H)).
    """
    T, B, I = x.shape
    H = h0.shape[1]
    O = w_io.shape[1]
    if b_tile is None:
        b_tile = B                     # single tile: best on 1-TC chips (v5e/v6e)
    assert H % 128 == 0, "hidden_size must be lane-aligned (128)"
    assert B % b_tile == 0 and b_tile % 8 == 0, "batch tile must be sublane-aligned"

    I_pad = 128 * pl.cdiv(I, 128)      # lane-dense streamed input
    O_pad = 128 * pl.cdiv(O, 128)      # lane-dense logits slab
    N_pad = H + O_pad                  # fused output dim (new_h | logits)

    # --- host-side weight prep: split at the concat boundary, fuse i2h/i2o, pad ------
    w_x = jnp.zeros((I_pad, N_pad), jnp.float32)
    w_x = w_x.at[:I, :H].set(w_ih[:I])
    w_x = w_x.at[:I, H:H + O].set(w_io[:I])
    w_h = jnp.zeros((H, N_pad), jnp.float32)
    w_h = w_h.at[:, :H].set(w_ih[I:])
    w_h = w_h.at[:, H:H + O].set(w_io[I:])
    b = jnp.zeros((1, N_pad), jnp.float32)
    b = b.at[0, :H].set(b_ih)
    b = b.at[0, H:H + O].set(b_io)

    # bf16 MXU inputs, f32 accumulation.
    w_x = w_x.astype(jnp.bfloat16)
    w_h = w_h.astype(jnp.bfloat16)
    x_pad = jnp.zeros((T, B, I_pad), jnp.bfloat16)
    x_pad = x_pad.at[:, :, :I].set(x.astype(jnp.bfloat16))

    num_b_tiles = B // b_tile
    grid = (num_b_tiles,)

    def rnn_kernel(h0_ref, wx_ref, wh_ref, b_ref, x_ref, out_h_ref, out_p_ref):
        # ---- prologue (off the recurrence critical path): x contribution + bias ----
        wx = wx_ref[...]                      # (I_pad, N_pad) bf16, VMEM-resident
        bias = b_ref[...]                     # (1, N_pad)     f32
        xc = [
            jnp.dot(x_ref[t], wx, preferred_element_type=jnp.float32) + bias
            for t in range(T)
        ]                                     # T x (b_tile, N_pad) f32

        wh = wh_ref[...]                      # (H, N_pad) bf16
        h = h0_ref[...]                       # (b_tile, H) f32, carried in vregs

        # ---- fully-unrolled serial recurrence over T ----
        for t in range(T):
            fused = xc[t] + jnp.dot(h.astype(wh.dtype), wh,
                                    preferred_element_type=jnp.float32)
            new_h = fused[:, :H]              # lane-aligned static slice
            logits = fused[:, H:]             # (b_tile, O_pad); valid lanes [0:O]

            # log-softmax over the O valid lanes only (padding masked before max/sum).
            lane = jax.lax.broadcasted_iota(jnp.int32, logits.shape, 1)
            masked = jnp.where(lane < O, logits, jnp.float32(-1e30))
            m = jnp.max(masked, axis=1, keepdims=True)
            e = jnp.exp(masked - m)           # padded lanes underflow to exactly 0
            lse = jnp.log(jnp.sum(e, axis=1, keepdims=True))
            log_probs = logits - m - lse      # pad lanes garbage; wrapper slices [:O]

            out_h_ref[t] = new_h.astype(out_h_ref.dtype)
            out_p_ref[t] = log_probs.astype(out_p_ref.dtype)
            h = new_h

    out_shapes = (
        jax.ShapeDtypeStruct((T, B, H), jnp.float32),      # per-step hidden
        jax.ShapeDtypeStruct((T, B, O_pad), jnp.float32),  # per-step log-probs (padded)
    )

    grid_spec = pltpu.PrefetchScalarGridSpec(
        num_scalar_prefetch=0,
        grid=grid,
        in_specs=[
            pl.BlockSpec((b_tile, H), lambda bi: (bi, 0)),            # h0
            pl.BlockSpec((I_pad, N_pad), lambda bi: (0, 0)),          # Wx (resident)
            pl.BlockSpec((H, N_pad), lambda bi: (0, 0)),              # Wh (resident)
            pl.BlockSpec((1, N_pad), lambda bi: (0, 0)),              # fused bias
            pl.BlockSpec((T, b_tile, I_pad), lambda bi: (0, bi, 0)),  # full x sequence
        ],
        out_specs=(
            pl.BlockSpec((T, b_tile, H), lambda bi: (0, bi, 0)),
            pl.BlockSpec((T, b_tile, O_pad), lambda bi: (0, bi, 0)),
        ),
    )

    out_h, out_p = pl.pallas_call(
        rnn_kernel,
        out_shape=out_shapes,
        grid_spec=grid_spec,
        compiler_params=pltpu.CompilerParams(
            dimension_semantics=("parallel",)),   # engages 2nd TC on v7x if b_tile<B
    )(h0, w_x, w_h, b, x_pad)

    return out_p[:, :, :O], out_h


def ref_forward(x, h0, w_ih, b_ih, w_io, b_io):
    """Pure-JAX reference with the same precision policy (bf16 MXU inputs, f32 accum)."""
    wih_b = w_ih.astype(jnp.bfloat16)
    wio_b = w_io.astype(jnp.bfloat16)
    T = x.shape[0]
    h = h0
    outs, hids = [], []
    for t in range(T):
        comb = jnp.concatenate(
            [x[t].astype(jnp.bfloat16), h.astype(jnp.bfloat16)], axis=1)
        new_h = jnp.dot(comb, wih_b, preferred_element_type=jnp.float32) + b_ih
        logits = jnp.dot(comb, wio_b, preferred_element_type=jnp.float32) + b_io
        outs.append(jax.nn.log_softmax(logits, axis=1))
        hids.append(new_h)
        h = new_h
    return jnp.stack(outs), jnp.stack(hids)


if __name__ == "__main__":
    # Shapes implied by the module: n_letters = 57, n_hidden = 128, ~18 name categories.
    T = 8              # sequence length (characters of a name)
    B = 16             # batch of names
    input_size = 57    # n_letters
    hidden_size = 128  # n_hidden
    output_size = 18   # language categories

    key = jax.random.PRNGKey(0)
    k_x, k_wih, k_bih, k_wio, k_bio = jax.random.split(key, 5)

    # One-hot character stream (like lineToTensor) + zero initial hidden.
    idx = jax.random.randint(k_x, (T, B), 0, input_size)
    x = jax.nn.one_hot(idx, input_size, dtype=jnp.float32)       # (T, B, I)
    h0 = jnp.zeros((B, hidden_size), dtype=jnp.float32)          # (B, H)

    fan_in = input_size + hidden_size
    bound = 1.0 / (fan_in ** 0.5)
    # Weights stored pre-transposed: (in_features, out_features).
    w_ih = jax.random.uniform(k_wih, (fan_in, hidden_size),
                              minval=-bound, maxval=bound, dtype=jnp.float32)
    b_ih = jax.random.uniform(k_bih, (hidden_size,),
                              minval=-bound, maxval=bound, dtype=jnp.float32)
    w_io = jax.random.uniform(k_wio, (fan_in, output_size),
                              minval=-bound, maxval=bound, dtype=jnp.float32)
    b_io = jax.random.uniform(k_bio, (output_size,),
                              minval=-bound, maxval=bound, dtype=jnp.float32)

    # Default b_tile = whole batch (best for single-TC v5e/v6e).
    # On v7x, pass b_tile=B // 2 to run one batch tile per TensorCore.
    log_probs, hiddens = rnn_forward_seq(x, h0, w_ih, b_ih, w_io, b_io)
    jax.block_until_ready((log_probs, hiddens))

    ref_p, ref_h = ref_forward(x, h0, w_ih, b_ih, w_io, b_io)
    assert jnp.allclose(hiddens, ref_h, atol=1e-2), (
        "hidden mismatch: max abs diff = %f" % float(jnp.max(jnp.abs(hiddens - ref_h))))
    assert jnp.allclose(log_probs, ref_p, atol=1e-2), (
        "log_softmax mismatch: max abs diff = %f" % float(jnp.max(jnp.abs(log_probs - ref_p))))

    # TODO(synk): note this module (like the PyTorch tutorial RNN) has NO tanh on the
    # hidden update; torch.nn.RNN would apply one.

    print("KERNEL_OK")
</pallas_src>

<mosaic_0001>
module attributes {stable_mosaic.version = 11 : i64} {
  func.func @rnn_kernel(%arg0: i32, %arg1: memref<16x128xf32, #tpu.memory_space<vmem>>, %arg2: memref<128x256xbf16, #tpu.memory_space<vmem>>, %arg3: memref<128x256xbf16, #tpu.memory_space<vmem>>, %arg4: memref<1x256xf32, #tpu.memory_space<vmem>>, %arg5: memref<8x16x128xbf16, #tpu.memory_space<vmem>>, %arg6: memref<8x16x128xf32, #tpu.memory_space<vmem>>, %arg7: memref<8x16x128xf32, #tpu.memory_space<vmem>>) attributes {dimension_semantics = [#tpu.dimension_semantics<parallel>], iteration_bounds = array<i64: 1>, scalar_prefetch = 0 : i64, scratch_operands = 0 : i64, tpu.core_type = #tpu.core_type<tc>, window_params = [{transform_indices = @transform_0, window_bounds = array<i64: 16, 128>}, {pipeline_mode = #tpu.pipeline_mode<synchronous>, transform_indices = @transform_1, window_bounds = array<i64: 128, 256>}, {pipeline_mode = #tpu.pipeline_mode<synchronous>, transform_indices = @transform_2, window_bounds = array<i64: 128, 256>}, {pipeline_mode = #tpu.pipeline_mode<synchronous>, transform_indices = @transform_3, window_bounds = array<i64: 1, 256>}, {transform_indices = @transform_4, window_bounds = array<i64: 8, 16, 128>}, {transform_indices = @transform_5, window_bounds = array<i64: 8, 16, 128>}, {transform_indices = @transform_6, window_bounds = array<i64: 8, 16, 128>}]} {
    %c0 = arith.constant 0 : index
    %c0_0 = arith.constant 0 : index
    %0 = vector.load %arg2[%c0, %c0_0] : memref<128x256xbf16, #tpu.memory_space<vmem>>, vector<128x256xbf16>
    %c0_1 = arith.constant 0 : index
    %c0_2 = arith.constant 0 : index
    %1 = vector.load %arg4[%c0_1, %c0_2] : memref<1x256xf32, #tpu.memory_space<vmem>>, vector<1x256xf32>
    %c0_3 = arith.constant 0 : index
    %c0_4 = arith.constant 0 : index
    %c0_5 = arith.constant 0 : index
    %2 = vector.load %arg5[%c0_3, %c0_4, %c0_5] : memref<8x16x128xbf16, #tpu.memory_space<vmem>>, vector<1x16x128xbf16>
    %3 = vector.shape_cast %2 : vector<1x16x128xbf16> to vector<16x128xbf16>
    %cst = arith.constant dense<0.000000e+00> : vector<16x256xf32>
    %4 = tpu.matmul %3, %0, %cst {dimension_numbers = #tpu.dot_dimension_numbers<[1], [0], [0], [1], [0, 0, 1, 1], [], []>} : vector<16x128xbf16>, vector<128x256xbf16>, vector<16x256xf32> -> vector<16x256xf32>
    %5 = vector.broadcast %1 : vector<1x256xf32> to vector<16x256xf32>
    %6 = arith.addf %4, %5 : vector<16x256xf32>
    %c1 = arith.constant 1 : index
    %c0_6 = arith.constant 0 : index
    %c0_7 = arith.constant 0 : index
    %7 = vector.load %arg5[%c1, %c0_6, %c0_7] : memref<8x16x128xbf16, #tpu.memory_space<vmem>>, vector<1x16x128xbf16>
    %8 = vector.shape_cast %7 : vector<1x16x128xbf16> to vector<16x128xbf16>
    %cst_8 = arith.constant dense<0.000000e+00> : vector<16x256xf32>
    %9 = tpu.matmul %8, %0, %cst_8 {dimension_numbers = #tpu.dot_dimension_numbers<[1], [0], [0], [1], [0, 0, 1, 1], [], []>} : vector<16x128xbf16>, vector<128x256xbf16>, vector<16x256xf32> -> vector<16x256xf32>
    %10 = vector.broadcast %1 : vector<1x256xf32> to vector<16x256xf32>
    %11 = arith.addf %9, %10 : vector<16x256xf32>
    %c2 = arith.constant 2 : index
    %c0_9 = arith.constant 0 : index
    %c0_10 = arith.constant 0 : index
    %12 = vector.load %arg5[%c2, %c0_9, %c0_10] : memref<8x16x128xbf16, #tpu.memory_space<vmem>>, vector<1x16x128xbf16>
    %13 = vector.shape_cast %12 : vector<1x16x128xbf16> to vector<16x128xbf16>
    %cst_11 = arith.constant dense<0.000000e+00> : vector<16x256xf32>
    %14 = tpu.matmul %13, %0, %cst_11 {dimension_numbers = #tpu.dot_dimension_numbers<[1], [0], [0], [1], [0, 0, 1, 1], [], []>} : vector<16x128xbf16>, vector<128x256xbf16>, vector<16x256xf32> -> vector<16x256xf32>
    %15 = vector.broadcast %1 : vector<1x256xf32> to vector<16x256xf32>
    %16 = arith.addf %14, %15 : vector<16x256xf32>
    %c3 = arith.constant 3 : index
    %c0_12 = arith.constant 0 : index
    %c0_13 = arith.constant 0 : index
    %17 = vector.load %arg5[%c3, %c0_12, %c0_13] : memref<8x16x128xbf16, #tpu.memory_space<vmem>>, vector<1x16x128xbf16>
    %18 = vector.shape_cast %17 : vector<1x16x128xbf16> to vector<16x128xbf16>
    %cst_14 = arith.constant dense<0.000000e+00> : vector<16x256xf32>
    %19 = tpu.matmul %18, %0, %cst_14 {dimension_numbers = #tpu.dot_dimension_numbers<[1], [0], [0], [1], [0, 0, 1, 1], [], []>} : vector<16x128xbf16>, vector<128x256xbf16>, vector<16x256xf32> -> vector<16x256xf32>
    %20 = vector.broadcast %1 : vector<1x256xf32> to vector<16x256xf32>
    %21 = arith.addf %19, %20 : vector<16x256xf32>
    %c4 = arith.constant 4 : index
    %c0_15 = arith.constant 0 : index
    %c0_16 = arith.constant 0 : index
    %22 = vector.load %arg5[%c4, %c0_15, %c0_16] : memref<8x16x128xbf16, #tpu.memory_space<vmem>>, vector<1x16x128xbf16>
    %23 = vector.shape_cast %22 : vector<1x16x128xbf16> to vector<16x128xbf16>
    %cst_17 = arith.constant dense<0.000000e+00> : vector<16x256xf32>
    %24 = tpu.matmul %23, %0, %cst_17 {dimension_numbers = #tpu.dot_dimension_numbers<[1], [0], [0], [1], [0, 0, 1, 1], [], []>} : vector<16x128xbf16>, vector<128x256xbf16>, vector<16x256xf32> -> vector<16x256xf32>
    %25 = vector.broadcast %1 : vector<1x256xf32> to vector<16x256xf32>
    %26 = arith.addf %24, %25 : vector<16x256xf32>
    %c5 = arith.constant 5 : index
    %c0_18 = arith.constant 0 : index
    %c0_19 = arith.constant 0 : index
    %27 = vector.load %arg5[%c5, %c0_18, %c0_19] : memref<8x16x128xbf16, #tpu.memory_space<vmem>>, vector<1x16x128xbf16>
    %28 = vector.shape_cast %27 : vector<1x16x128xbf16> to vector<16x128xbf16>
    %cst_20 = arith.constant dense<0.000000e+00> : vector<16x256xf32>
    %29 = tpu.matmul %28, %0, %cst_20 {dimension_numbers = #tpu.dot_dimension_numbers<[1], [0], [0], [1], [0, 0, 1, 1], [], []>} : vector<16x128xbf16>, vector<128x256xbf16>, vector<16x256xf32> -> vector<16x256xf32>
    %30 = vector.broadcast %1 : vector<1x256xf32> to vector<16x256xf32>
    %31 = arith.addf %29, %30 : vector<16x256xf32>
    %c6 = arith.constant 6 : index
    %c0_21 = arith.constant 0 : index
    %c0_22 = arith.constant 0 : index
    %32 = vector.load %arg5[%c6, %c0_21, %c0_22] : memref<8x16x128xbf16, #tpu.memory_space<vmem>>, vector<1x16x128xbf16>
    %33 = vector.shape_cast %32 : vector<1x16x128xbf16> to vector<16x128xbf16>
    %cst_23 = arith.constant dense<0.000000e+00> : vector<16x256xf32>
    %34 = tpu.matmul %33, %0, %cst_23 {dimension_numbers = #tpu.dot_dimension_numbers<[1], [0], [0], [1], [0, 0, 1, 1], [], []>} : vector<16x128xbf16>, vector<128x256xbf16>, vector<16x256xf32> -> vector<16x256xf32>
    %35 = vector.broadcast %1 : vector<1x256xf32> to vector<16x256xf32>
    %36 = arith.addf %34, %35 : vector<16x256xf32>
    %c7 = arith.constant 7 : index
    %c0_24 = arith.constant 0 : index
    %c0_25 = arith.constant 0 : index
    %37 = vector.load %arg5[%c7, %c0_24, %c0_25] : memref<8x16x128xbf16, #tpu.memory_space<vmem>>, vector<1x16x128xbf16>
    %38 = vector.shape_cast %37 : vector<1x16x128xbf16> to vector<16x128xbf16>
    %cst_26 = arith.constant dense<0.000000e+00> : vector<16x256xf32>
    %39 = tpu.matmul %38, %0, %cst_26 {dimension_numbers = #tpu.dot_dimension_numbers<[1], [0], [0], [1], [0, 0, 1, 1], [], []>} : vector<16x128xbf16>, vector<128x256xbf16>, vector<16x256xf32> -> vector<16x256xf32>
    %40 = vector.broadcast %1 : vector<1x256xf32> to vector<16x256xf32>
    %41 = arith.addf %39, %40 : vector<16x256xf32>
    %c0_27 = arith.constant 0 : index
    %c0_28 = arith.constant 0 : index
    %42 = vector.load %arg3[%c0_27, %c0_28] : memref<128x256xbf16, #tpu.memory_space<vmem>>, vector<128x256xbf16>
    %c0_29 = arith.constant 0 : index
    %c0_30 = arith.constant 0 : index
    %43 = vector.load %arg1[%c0_29, %c0_30] : memref<16x128xf32, #tpu.memory_space<vmem>>, vector<16x128xf32>
    %44 = arith.truncf %43 : vector<16x128xf32> to vector<16x128xbf16>
    %cst_31 = arith.constant dense<0.000000e+00> : vector<16x256xf32>
    %45 = tpu.matmul %44, %42, %cst_31 {dimension_numbers = #tpu.dot_dimension_numbers<[1], [0], [0], [1], [0, 0, 1, 1], [], []>} : vector<16x128xbf16>, vector<128x256xbf16>, vector<16x256xf32> -> vector<16x256xf32>
    %46 = arith.addf %6, %45 : vector<16x256xf32>
    %47 = vector.extract_strided_slice %46 {offsets = [0, 0], sizes = [16, 128], strides = [1, 1]} : vector<16x256xf32> to vector<16x128xf32>
    %48 = vector.extract_strided_slice %46 {offsets = [0, 128], sizes = [16, 128], strides = [1, 1]} : vector<16x256xf32> to vector<16x128xf32>
    %49 = tpu.iota {dimensions = array<i32: 1>} : vector<16x128xi32>
    %c18_i32 = arith.constant 18 : i32
    %50 = vector.broadcast %c18_i32 : i32 to vector<16x128xi32>
    %51 = arith.cmpi slt, %49, %50 : vector<16x128xi32>
    %cst_32 = arith.constant -1.000000e+30 : f32
    %52 = vector.broadcast %cst_32 : f32 to vector<16x128xf32>
    %53 = arith.select %51, %48, %52 : vector<16x128xi1>, vector<16x128xf32>
    %cst_33 = arith.constant dense<0xFF800000> : vector<16xf32>
    %54 = vector.multi_reduction <maximumf>, %53, %cst_33 [1] : vector<16x128xf32> to vector<16xf32>
    %55 = vector.shape_cast %54 : vector<16xf32> to vector<16x1xf32>
    %56 = vector.broadcast %55 : vector<16x1xf32> to vector<16x128xf32>
    %57 = arith.subf %53, %56 : vector<16x128xf32>
    %58 = math.exp %57 : vector<16x128xf32>
    %cst_34 = arith.constant dense<0.000000e+00> : vector<16xf32>
    %59 = vector.multi_reduction <add>, %58, %cst_34 [1] : vector<16x128xf32> to vector<16xf32>
    %60 = vector.shape_cast %59 : vector<16xf32> to vector<16x1xf32>
    %61 = math.log %60 : vector<16x1xf32>
    %62 = vector.broadcast %55 : vector<16x1xf32> to vector<16x128xf32>
    %63 = arith.subf %48, %62 : vector<16x128xf32>
    %64 = vector.broadcast %61 : vector<16x1xf32> to vector<16x128xf32>
    %65 = arith.subf %63, %64 : vector<16x128xf32>
    %c0_35 = arith.constant 0 : index
    %c0_36 = arith.constant 0 : index
    %c0_37 = arith.constant 0 : index
    %66 = vector.load %arg6[%c0_35, %c0_36, %c0_37] : memref<8x16x128xf32, #tpu.memory_space<vmem>>, vector<1x16x128xf32>
    %67 = vector.shape_cast %66 : vector<1x16x128xf32> to vector<16x128xf32>
    %68 = vector.shape_cast %47 : vector<16x128xf32> to vector<1x16x128xf32>
    tpu.vector_store %arg6[%c0_35, %c0_36, %c0_37], %68 {strides = array<i32>} : memref<8x16x128xf32, #tpu.memory_space<vmem>>, vector<1x16x128xf32>,
    %c0_38 = arith.constant 0 : index
    %c0_39 = arith.constant 0 : index
    %c0_40 = arith.constant 0 : index
    %69 = vector.load %arg7[%c0_38, %c0_39, %c0_40] : memref<8x16x128xf32, #tpu.memory_space<vmem>>, vector<1x16x128xf32>
    %70 = vector.shape_cast %69 : vector<1x16x128xf32> to vector<16x128xf32>
    %71 = vector.shape_cast %65 : vector<16x128xf32> to vector<1x16x128xf32>
    tpu.vector_store %arg7[%c0_38, %c0_39, %c0_40], %71 {strides = array<i32>} : memref<8x16x128xf32, #tpu.memory_space<vmem>>, vector<1x16x128xf32>,
    %72 = arith.truncf %47 : vector<16x128xf32> to vector<16x128xbf16>
    %cst_41 = arith.constant dense<0.000000e+00> : vector<16x256xf32>
    %73 = tpu.matmul %72, %42, %cst_41 {dimension_numbers = #tpu.dot_dimension_numbers<[1], [0], [0], [1], [0, 0, 1, 1], [], []>} : vector<16x128xbf16>, vector<128x256xbf16>, vector<16x256xf32> -> vector<16x256xf32>
    %74 = arith.addf %11, %73 : vector<16x256xf32>
    %75 = vector.extract_strided_slice %74 {offsets = [0, 0], sizes = [16, 128], strides = [1, 1]} : vector<16x256xf32> to vector<16x128xf32>
    %76 = vector.extract_strided_slice %74 {offsets = [0, 128], sizes = [16, 128], strides = [1, 1]} : vector<16x256xf32> to vector<16x128xf32>
    %77 = tpu.iota {dimensions = array<i32: 1>} : vector<16x128xi32>
    %c18_i32_42 = arith.constant 18 : i32
    %78 = vector.broadcast %c18_i32_42 : i32 to vector<16x128xi32>
    %79 = arith.cmpi slt, %77, %78 : vector<16x128xi32>
    %cst_43 = arith.constant -1.000000e+30 : f32
    %80 = vector.broadcast %cst_43 : f32 to vector<16x128xf32>
    %81 = arith.select %79, %76, %80 : vector<16x128xi1>, vector<16x128xf32>
    %cst_44 = arith.constant dense<0xFF800000> : vector<16xf32>
    %82 = vector.multi_reduction <maximumf>, %81, %cst_44 [1] : vector<16x128xf32> to vector<16xf32>
    %83 = vector.shape_cast %82 : vector<16xf32> to vector<16x1xf32>
    %84 = vector.broadcast %83 : vector<16x1xf32> to vector<16x128xf32>
    %85 = arith.subf %81, %84 : vector<16x128xf32>
    %86 = math.exp %85 : vector<16x128xf32>
    %cst_45 = arith.constant dense<0.000000e+00> : vector<16xf32>
    %87 = vector.multi_reduction <add>, %86, %cst_45 [1] : vector<16x128xf32> to vector<16xf32>
    %88 = vector.shape_cast %87 : vector<16xf32> to vector<16x1xf32>
    %89 = math.log %88 : vector<16x1xf32>
    %90 = vector.broadcast %83 : vector<16x1xf32> to vector<16x128xf32>
    %91 = arith.subf %76, %90 : vector<16x128xf32>
    %92 = vector.broadcast %89 : vector<16x1xf32> to vector<16x128xf32>
    %93 = arith.subf %91, %92 : vector<16x128xf32>
    %c1_46 = arith.constant 1 : index
    %c0_47 = arith.constant 0 : index
    %c0_48 = arith.constant 0 : index
    %94 = vector.load %arg6[%c1_46, %c0_47, %c0_48] : memref<8x16x128xf32, #tpu.memory_space<vmem>>, vector<1x16x128xf32>
    %95 = vector.shape_cast %94 : vector<1x16x128xf32> to vector<16x128xf32>
    %96 = vector.shape_cast %75 : vector<16x128xf32> to vector<1x16x128xf32>
    tpu.vector_store %arg6[%c1_46, %c0_47, %c0_48], %96 {strides = array<i32>} : memref<8x16x128xf32, #tpu.memory_space<vmem>>, vector<1x16x128xf32>,
    %c1_49 = arith.constant 1 : index
    %c0_50 = arith.constant 0 : index
    %c0_51 = arith.constant 0 : index
    %97 = vector.load %arg7[%c1_49, %c0_50, %c0_51] : memref<8x16x128xf32, #tpu.memory_space<vmem>>, vector<1x16x128xf32>
    %98 = vector.shape_cast %97 : vector<1x16x128xf32> to vector<16x128xf32>
    %99 = vector.shape_cast %93 : vector<16x128xf32> to vector<1x16x128xf32>
    tpu.vector_store %arg7[%c1_49, %c0_50, %c0_51], %99 {strides = array<i32>} : memref<8x16x128xf32, #tpu.memory_space<vmem>>, vector<1x16x128xf32>,
    %100 = arith.truncf %75 : vector<16x128xf32> to vector<16x128xbf16>
    %cst_52 = arith.constant dense<0.000000e+00> : vector<16x256xf32>
    %101 = tpu.matmul %100, %42, %cst_52 {dimension_numbers = #tpu.dot_dimension_numbers<[1], [0], [0], [1], [0, 0, 1, 1], [], []>} : vector<16x128xbf16>, vector<128x256xbf16>, vector<16x256xf32> -> vector<16x256xf32>
    %102 = arith.addf %16, %101 : vector<16x256xf32>
    %103 = vector.extract_strided_slice %102 {offsets = [0, 0], sizes = [16, 128], strides = [1, 1]} : vector<16x256xf32> to vector<16x128xf32>
    %104 = vector.extract_strided_slice %102 {offsets = [0, 128], sizes = [16, 128], strides = [1, 1]} : vector<16x256xf32> to vector<16x128xf32>
    %105 = tpu.iota {dimensions = array<i32: 1>} : vector<16x128xi32>
    %c18_i32_53 = arith.constant 18 : i32
    %106 = vector.broadcast %c18_i32_53 : i32 to vector<16x128xi32>
    %107 = arith.cmpi slt, %105, %106 : vector<16x128xi32>
    %cst_54 = arith.constant -1.000000e+30 : f32
    %108 = vector.broadcast %cst_54 : f32 to vector<16x128xf32>
    %109 = arith.select %107, %104, %108 : vector<16x128xi1>, vector<16x128xf32>
    %cst_55 = arith.constant dense<0xFF800000> : vector<16xf32>
    %110 = vector.multi_reduction <maximumf>, %109, %cst_55 [1] : vector<16x128xf32> to vector<16xf32>
    %111 = vector.shape_cast %110 : vector<16xf32> to vector<16x1xf32>
    %112 = vector.broadcast %111 : vector<16x1xf32> to vector<16x128xf32>
    %113 = arith.subf %109, %112 : vector<16x128xf32>
    %114 = math.exp %113 : vector<16x128xf32>
    %cst_56 = arith.constant dense<0.000000e+00> : vector<16xf32>
    %115 = vector.multi_reduction <add>, %114, %cst_56 [1] : vector<16x128xf32> to vector<16xf32>
    %116 = vector.shape_cast %115 : vector<16xf32> to vector<16x1xf32>
    %117 = math.log %116 : vector<16x1xf32>
    %118 = vector.broadcast %111 : vector<16x1xf32> to vector<16x128xf32>
    %119 = arith.subf %104, %118 : vector<16x128xf32>
    %120 = vector.broadcast %117 : vector<16x1xf32> to vector<16x128xf32>
    %121 = arith.subf %119, %120 : vector<16x128xf32>
    %c2_57 = arith.constant 2 : index
    %c0_58 = arith.constant 0 : index
    %c0_59 = arith.constant 0 : index
    %122 = vector.load %arg6[%c2_57, %c0_58, %c0_59] : memref<8x16x128xf32, #tpu.memory_space<vmem>>, vector<1x16x128xf32>
    %123 = vector.shape_cast %122 : vector<1x16x128xf32> to vector<16x128xf32>
    %124 = vector.shape_cast %103 : vector<16x128xf32> to vector<1x16x128xf32>
    tpu.vector_store %arg6[%c2_57, %c0_58, %c0_59], %124 {strides = array<i32>} : memref<8x16x128xf32, #tpu.memory_space<vmem>>, vector<1x16x128xf32>,
    %c2_60 = arith.constant 2 : index
    %c0_61 = arith.constant 0 : index
    %c0_62 = arith.constant 0 : index
    %125 = vector.load %arg7[%c2_60, %c0_61, %c0_62] : memref<8x16x128xf32, #tpu.memory_space<vmem>>, vector<1x16x128xf32>
    %126 = vector.shape_cast %125 : vector<1x16x128xf32> to vector<16x128xf32>
    %127 = vector.shape_cast %121 : vector<16x128xf32> to vector<1x16x128xf32>
    tpu.vector_store %arg7[%c2_60, %c0_61, %c0_62], %127 {strides = array<i32>} : memref<8x16x128xf32, #tpu.memory_space<vmem>>, vector<1x16x128xf32>,
    %128 = arith.truncf %103 : vector<16x128xf32> to vector<16x128xbf16>
    %cst_63 = arith.constant dense<0.000000e+00> : vector<16x256xf32>
    %129 = tpu.matmul %128, %42, %cst_63 {dimension_numbers = #tpu.dot_dimension_numbers<[1], [0], [0], [1], [0, 0, 1, 1], [], []>} : vector<16x128xbf16>, vector<128x256xbf16>, vector<16x256xf32> -> vector<16x256xf32>
    %130 = arith.addf %21, %129 : vector<16x256xf32>
    %131 = vector.extract_strided_slice %130 {offsets = [0, 0], sizes = [16, 128], strides = [1, 1]} : vector<16x256xf32> to vector<16x128xf32>
    %132 = vector.extract_strided_slice %130 {offsets = [0, 128], sizes = [16, 128], strides = [1, 1]} : vector<16x256xf32> to vector<16x128xf32>
    %133 = tpu.iota {dimensions = array<i32: 1>} : vector<16x128xi32>
    %c18_i32_64 = arith.constant 18 : i32
    %134 = vector.broadcast %c18_i32_64 : i32 to vector<16x128xi32>
    %135 = arith.cmpi slt, %133, %134 : vector<16x128xi32>
    %cst_65 = arith.constant -1.000000e+30 : f32
    %136 = vector.broadcast %cst_65 : f32 to vector<16x128xf32>
    %137 = arith.select %135, %132, %136 : vector<16x128xi1>, vector<16x128xf32>
    %cst_66 = arith.constant dense<0xFF800000> : vector<16xf32>
    %138 = vector.multi_reduction <maximumf>, %137, %cst_66 [1] : vector<16x128xf32> to vector<16xf32>
    %139 = vector.shape_cast %138 : vector<16xf32> to vector<16x1xf32>
    %140 = vector.broadcast %139 : vector<16x1xf32> to vector<16x128xf32>
    %141 = arith.subf %137, %140 : vector<16x128xf32>
    %142 = math.exp %141 : vector<16x128xf32>
    %cst_67 = arith.constant dense<0.000000e+00> : vector<16xf32>
    %143 = vector.multi_reduction <add>, %142, %cst_67 [1] : vector<16x128xf32> to vector<16xf32>
    %144 = vector.shape_cast %143 : vector<16xf32> to vector<16x1xf32>
    %145 = math.log %144 : vector<16x1xf32>
    %146 = vector.broadcast %139 : vector<16x1xf32> to vector<16x128xf32>
    %147 = arith.subf %132, %146 : vector<16x128xf32>
    %148 = vector.broadcast %145 : vector<16x1xf32> to vector<16x128xf32>
    %149 = arith.subf %147, %148 : vector<16x128xf32>
    %c3_68 = arith.constant 3 : index
    %c0_69 = arith.constant 0 : index
    %c0_70 = arith.constant 0 : index
    %150 = vector.load %arg6[%c3_68, %c0_69, %c0_70] : memref<8x16x128xf32, #tpu.memory_space<vmem>>, vector<1x16x128xf32>
    %151 = vector.shape_cast %150 : vector<1x16x128xf32> to vector<16x128xf32>
    %152 = vector.shape_cast %131 : vector<16x128xf32> to vector<1x16x128xf32>
    tpu.vector_store %arg6[%c3_68, %c0_69, %c0_70], %152 {strides = array<i32>} : memref<8x16x128xf32, #tpu.memory_space<vmem>>, vector<1x16x128xf32>,
    %c3_71 = arith.constant 3 : index
    %c0_72 = arith.constant 0 : index
    %c0_73 = arith.constant 0 : index
    %153 = vector.load %arg7[%c3_71, %c0_72, %c0_73] : memref<8x16x128xf32, #tpu.memory_space<vmem>>, vector<1x16x128xf32>
    %154 = vector.shape_cast %153 : vector<1x16x128xf32> to vector<16x128xf32>
    %155 = vector.shape_cast %149 : vector<16x128xf32> to vector<1x16x128xf32>
    tpu.vector_store %arg7[%c3_71, %c0_72, %c0_73], %155 {strides = array<i32>} : memref<8x16x128xf32, #tpu.memory_space<vmem>>, vector<1x16x128xf32>,
    %156 = arith.truncf %131 : vector<16x128xf32> to vector<16x128xbf16>
    %cst_74 = arith.constant dense<0.000000e+00> : vector<16x256xf32>
    %157 = tpu.matmul %156, %42, %cst_74 {dimension_numbers = #tpu.dot_dimension_numbers<[1], [0], [0], [1], [0, 0, 1, 1], [], []>} : vector<16x128xbf16>, vector<128x256xbf16>, vector<16x256xf32> -> vector<16x256xf32>
    %158 = arith.addf %26, %157 : vector<16x256xf32>
    %159 = vector.extract_strided_slice %158 {offsets = [0, 0], sizes = [16, 128], strides = [1, 1]} : vector<16x256xf32> to vector<16x128xf32>
    %160 = vector.extract_strided_slice %158 {offsets = [0, 128], sizes = [16, 128], strides = [1, 1]} : vector<16x256xf32> to vector<16x128xf32>
    %161 = tpu.iota {dimensions = array<i32: 1>} : vector<16x128xi32>
    %c18_i32_75 = arith.constant 18 : i32
    %162 = vector.broadcast %c18_i32_75 : i32 to vector<16x128xi32>
    %163 = arith.cmpi slt, %161, %162 : vector<16x128xi32>
    %cst_76 = arith.constant -1.000000e+30 : f32
    %164 = vector.broadcast %cst_76 : f32 to vector<16x128xf32>
    %165 = arith.select %163, %160, %164 : vector<16x128xi1>, vector<16x128xf32>
    %cst_77 = arith.constant dense<0xFF800000> : vector<16xf32>
    %166 = vector.multi_reduction <maximumf>, %165, %cst_77 [1] : vector<16x128xf32> to vector<16xf32>
    %167 = vector.shape_cast %166 : vector<16xf32> to vector<16x1xf32>
    %168 = vector.broadcast %167 : vector<16x1xf32> to vector<16x128xf32>
    %169 = arith.subf %165, %168 : vector<16x128xf32>
    %170 = math.exp %169 : vector<16x128xf32>
    %cst_78 = arith.constant dense<0.000000e+00> : vector<16xf32>
    %171 = vector.multi_reduction <add>, %170, %cst_78 [1] : vector<16x128xf32> to vector<16xf32>
    %172 = vector.shape_cast %171 : vector<16xf32> to vector<16x1xf32>
    %173 = math.log %172 : vector<16x1xf32>
    %174 = vector.broadcast %167 : vector<16x1xf32> to vector<16x128xf32>
    %175 = arith.subf %160, %174 : vector<16x128xf32>
    %176 = vector.broadcast %173 : vector<16x1xf32> to vector<16x128xf32>
    %177 = arith.subf %175, %176 : vector<16x128xf32>
    %c4_79 = arith.constant 4 : index
    %c0_80 = arith.constant 0 : index
    %c0_81 = arith.constant 0 : index
    %178 = vector.load %arg6[%c4_79, %c0_80, %c0_81] : memref<8x16x128xf32, #tpu.memory_space<vmem>>, vector<1x16x128xf32>
    %179 = vector.shape_cast %178 : vector<1x16x128xf32> to vector<16x128xf32>
    %180 = vector.shape_cast %159 : vector<16x128xf32> to vector<1x16x128xf32>
    tpu.vector_store %arg6[%c4_79, %c0_80, %c0_81], %180 {strides = array<i32>} : memref<8x16x128xf32, #tpu.memory_space<vmem>>, vector<1x16x128xf32>,
    %c4_82 = arith.constant 4 : index
    %c0_83 = arith.constant 0 : index
    %c0_84 = arith.constant 0 : index
    %181 = vector.load %arg7[%c4_82, %c0_83, %c0_84] : memref<8x16x128xf32, #tpu.memory_space<vmem>>, vector<1x16x128xf32>
    %182 = vector.shape_cast %181 : vector<1x16x128xf32> to vector<16x128xf32>
    %183 = vector.shape_cast %177 : vector<16x128xf32> to vector<1x16x128xf32>
    tpu.vector_store %arg7[%c4_82, %c0_83, %c0_84], %183 {strides = array<i32>} : memref<8x16x128xf32, #tpu.memory_space<vmem>>, vector<1x16x128xf32>,
    %184 = arith.truncf %159 : vector<16x128xf32> to vector<16x128xbf16>
    %cst_85 = arith.constant dense<0.000000e+00> : vector<16x256xf32>
    %185 = tpu.matmul %184, %42, %cst_85 {dimension_numbers = #tpu.dot_dimension_numbers<[1], [0], [0], [1], [0, 0, 1, 1], [], []>} : vector<16x128xbf16>, vector<128x256xbf16>, vector<16x256xf32> -> vector<16x256xf32>
    %186 = arith.addf %31, %185 : vector<16x256xf32>
    %187 = vector.extract_strided_slice %186 {offsets = [0, 0], sizes = [16, 128], strides = [1, 1]} : vector<16x256xf32> to vector<16x128xf32>
    %188 = vector.extract_strided_slice %186 {offsets = [0, 128], sizes = [16, 128], strides = [1, 1]} : vector<16x256xf32> to vector<16x128xf32>
    %189 = tpu.iota {dimensions = array<i32: 1>} : vector<16x128xi32>
    %c18_i32_86 = arith.constant 18 : i32
    %190 = vector.broadcast %c18_i32_86 : i32 to vector<16x128xi32>
    %191 = arith.cmpi slt, %189, %190 : vector<16x128xi32>
    %cst_87 = arith.constant -1.000000e+30 : f32
    %192 = vector.broadcast %cst_87 : f32 to vector<16x128xf32>
    %193 = arith.select %191, %188, %192 : vector<16x128xi1>, vector<16x128xf32>
    %cst_88 = arith.constant dense<0xFF800000> : vector<16xf32>
    %194 = vector.multi_reduction <maximumf>, %193, %cst_88 [1] : vector<16x128xf32> to vector<16xf32>
    %195 = vector.shape_cast %194 : vector<16xf32> to vector<16x1xf32>
    %196 = vector.broadcast %195 : vector<16x1xf32> to vector<16x128xf32>
    %197 = arith.subf %193, %196 : vector<16x128xf32>
    %198 = math.exp %197 : vector<16x128xf32>
    %cst_89 = arith.constant dense<0.000000e+00> : vector<16xf32>
    %199 = vector.multi_reduction <add>, %198, %cst_89 [1] : vector<16x128xf32> to vector<16xf32>
    %200 = vector.shape_cast %199 : vector<16xf32> to vector<16x1xf32>
    %201 = math.log %200 : vector<16x1xf32>
    %202 = vector.broadcast %195 : vector<16x1xf32> to vector<16x128xf32>
    %203 = arith.subf %188, %202 : vector<16x128xf32>
    %204 = vector.broadcast %201 : vector<16x1xf32> to vector<16x128xf32>
    %205 = arith.subf %203, %204 : vector<16x128xf32>
    %c5_90 = arith.constant 5 : index
    %c0_91 = arith.constant 0 : index
    %c0_92 = arith.constant 0 : index
    %206 = vector.load %arg6[%c5_90, %c0_91, %c0_92] : memref<8x16x128xf32, #tpu.memory_space<vmem>>, vector<1x16x128xf32>
    %207 = vector.shape_cast %206 : vector<1x16x128xf32> to vector<16x128xf32>
    %208 = vector.shape_cast %187 : vector<16x128xf32> to vector<1x16x128xf32>
    tpu.vector_store %arg6[%c5_90, %c0_91, %c0_92], %208 {strides = array<i32>} : memref<8x16x128xf32, #tpu.memory_space<vmem>>, vector<1x16x128xf32>,
    %c5_93 = arith.constant 5 : index
    %c0_94 = arith.constant 0 : index
    %c0_95 = arith.constant 0 : index
    %209 = vector.load %arg7[%c5_93, %c0_94, %c0_95] : memref<8x16x128xf32, #tpu.memory_space<vmem>>, vector<1x16x128xf32>
    %210 = vector.shape_cast %209 : vector<1x16x128xf32> to vector<16x128xf32>
    %211 = vector.shape_cast %205 : vector<16x128xf32> to vector<1x16x128xf32>
    tpu.vector_store %arg7[%c5_93, %c0_94, %c0_95], %211 {strides = array<i32>} : memref<8x16x128xf32, #tpu.memory_space<vmem>>, vector<1x16x128xf32>,
    %212 = arith.truncf %187 : vector<16x128xf32> to vector<16x128xbf16>
    %cst_96 = arith.constant dense<0.000000e+00> : vector<16x256xf32>
    %213 = tpu.matmul %212, %42, %cst_96 {dimension_numbers = #tpu.dot_dimension_numbers<[1], [0], [0], [1], [0, 0, 1, 1], [], []>} : vector<16x128xbf16>, vector<128x256xbf16>, vector<16x256xf32> -> vector<16x256xf32>
    %214 = arith.addf %36, %213 : vector<16x256xf32>
    %215 = vector.extract_strided_slice %214 {offsets = [0, 0], sizes = [16, 128], strides = [1, 1]} : vector<16x256xf32> to vector<16x128xf32>
    %216 = vector.extract_strided_slice %214 {offsets = [0, 128], sizes = [16, 128], strides = [1, 1]} : vector<16x256xf32> to vector<16x128xf32>
    %217 = tpu.iota {dimensions = array<i32: 1>} : vector<16x128xi32>
    %c18_i32_97 = arith.constant 18 : i32
    %218 = vector.broadcast %c18_i32_97 : i32 to vector<16x128xi32>
    %219 = arith.cmpi slt, %217, %218 : vector<16x128xi32>
    %cst_98 = arith.constant -1.000000e+30 : f32
    %220 = vector.broadcast %cst_98 : f32 to vector<16x128xf32>
    %221 = arith.select %219, %216, %220 : vector<16x128xi1>, vector<16x128xf32>
    %cst_99 = arith.constant dense<0xFF800000> : vector<16xf32>
    %222 = vector.multi_reduction <maximumf>, %221, %cst_99 [1] : vector<16x128xf32> to vector<16xf32>
    %223 = vector.shape_cast %222 : vector<16xf32> to vector<16x1xf32>
    %224 = vector.broadcast %223 : vector<16x1xf32> to vector<16x128xf32>
    %225 = arith.subf %221, %224 : vector<16x128xf32>
    %226 = math.exp %225 : vector<16x128xf32>
    %cst_100 = arith.constant dense<0.000000e+00> : vector<16xf32>
    %227 = vector.multi_reduction <add>, %226, %cst_100 [1] : vector<16x128xf32> to vector<16xf32>
    %228 = vector.shape_cast %227 : vector<16xf32> to vector<16x1xf32>
    %229 = math.log %228 : vector<16x1xf32>
    %230 = vector.broadcast %223 : vector<16x1xf32> to vector<16x128xf32>
    %231 = arith.subf %216, %230 : vector<16x128xf32>
    %232 = vector.broadcast %229 : vector<16x1xf32> to vector<16x128xf32>
    %233 = arith.subf %231, %232 : vector<16x128xf32>
    %c6_101 = arith.constant 6 : index
    %c0_102 = arith.constant 0 : index
    %c0_103 = arith.constant 0 : index
    %234 = vector.load %arg6[%c6_101, %c0_102, %c0_103] : memref<8x16x128xf32, #tpu.memory_space<vmem>>, vector<1x16x128xf32>
    %235 = vector.shape_cast %234 : vector<1x16x128xf32> to vector<16x128xf32>
    %236 = vector.shape_cast %215 : vector<16x128xf32> to vector<1x16x128xf32>
    tpu.vector_store %arg6[%c6_101, %c0_102, %c0_103], %236 {strides = array<i32>} : memref<8x16x128xf32, #tpu.memory_space<vmem>>, vector<1x16x128xf32>,
    %c6_104 = arith.constant 6 : index
    %c0_105 = arith.constant 0 : index
    %c0_106 = arith.constant 0 : index
    %237 = vector.load %arg7[%c6_104, %c0_105, %c0_106] : memref<8x16x128xf32, #tpu.memory_space<vmem>>, vector<1x16x128xf32>
    %238 = vector.shape_cast %237 : vector<1x16x128xf32> to vector<16x128xf32>
    %239 = vector.shape_cast %233 : vector<16x128xf32> to vector<1x16x128xf32>
    tpu.vector_store %arg7[%c6_104, %c0_105, %c0_106], %239 {strides = array<i32>} : memref<8x16x128xf32, #tpu.memory_space<vmem>>, vector<1x16x128xf32>,
    %240 = arith.truncf %215 : vector<16x128xf32> to vector<16x128xbf16>
    %cst_107 = arith.constant dense<0.000000e+00> : vector<16x256xf32>
    %241 = tpu.matmul %240, %42, %cst_107 {dimension_numbers = #tpu.dot_dimension_numbers<[1], [0], [0], [1], [0, 0, 1, 1], [], []>} : vector<16x128xbf16>, vector<128x256xbf16>, vector<16x256xf32> -> vector<16x256xf32>
    %242 = arith.addf %41, %241 : vector<16x256xf32>
    %243 = vector.extract_strided_slice %242 {offsets = [0, 0], sizes = [16, 128], strides = [1, 1]} : vector<16x256xf32> to vector<16x128xf32>
    %244 = vector.extract_strided_slice %242 {offsets = [0, 128], sizes = [16, 128], strides = [1, 1]} : vector<16x256xf32> to vector<16x128xf32>
    %245 = tpu.iota {dimensions = array<i32: 1>} : vector<16x128xi32>
    %c18_i32_108 = arith.constant 18 : i32
    %246 = vector.broadcast %c18_i32_108 : i32 to vector<16x128xi32>
    %247 = arith.cmpi slt, %245, %246 : vector<16x128xi32>
    %cst_109 = arith.constant -1.000000e+30 : f32
    %248 = vector.broadcast %cst_109 : f32 to vector<16x128xf32>
    %249 = arith.select %247, %244, %248 : vector<16x128xi1>, vector<16x128xf32>
    %cst_110 = arith.constant dense<0xFF800000> : vector<16xf32>
    %250 = vector.multi_reduction <maximumf>, %249, %cst_110 [1] : vector<16x128xf32> to vector<16xf32>
    %251 = vector.shape_cast %250 : vector<16xf32> to vector<16x1xf32>
    %252 = vector.broadcast %251 : vector<16x1xf32> to vector<16x128xf32>
    %253 = arith.subf %249, %252 : vector<16x128xf32>
    %254 = math.exp %253 : vector<16x128xf32>
    %cst_111 = arith.constant dense<0.000000e+00> : vector<16xf32>
    %255 = vector.multi_reduction <add>, %254, %cst_111 [1] : vector<16x128xf32> to vector<16xf32>
    %256 = vector.shape_cast %255 : vector<16xf32> to vector<16x1xf32>
    %257 = math.log %256 : vector<16x1xf32>
    %258 = vector.broadcast %251 : vector<16x1xf32> to vector<16x128xf32>
    %259 = arith.subf %244, %258 : vector<16x128xf32>
    %260 = vector.broadcast %257 : vector<16x1xf32> to vector<16x128xf32>
    %261 = arith.subf %259, %260 : vector<16x128xf32>
    %c7_112 = arith.constant 7 : index
    %c0_113 = arith.constant 0 : index
    %c0_114 = arith.constant 0 : index
    %262 = vector.load %arg6[%c7_112, %c0_113, %c0_114] : memref<8x16x128xf32, #tpu.memory_space<vmem>>, vector<1x16x128xf32>
    %263 = vector.shape_cast %262 : vector<1x16x128xf32> to vector<16x128xf32>
    %264 = vector.shape_cast %243 : vector<16x128xf32> to vector<1x16x128xf32>
    tpu.vector_store %arg6[%c7_112, %c0_113, %c0_114], %264 {strides = array<i32>} : memref<8x16x128xf32, #tpu.memory_space<vmem>>, vector<1x16x128xf32>,
    %c7_115 = arith.constant 7 : index
    %c0_116 = arith.constant 0 : index
    %c0_117 = arith.constant 0 : index
    %265 = vector.load %arg7[%c7_115, %c0_116, %c0_117] : memref<8x16x128xf32, #tpu.memory_space<vmem>>, vector<1x16x128xf32>
    %266 = vector.shape_cast %265 : vector<1x16x128xf32> to vector<16x128xf32>
    %267 = vector.shape_cast %261 : vector<16x128xf32> to vector<1x16x128xf32>
    tpu.vector_store %arg7[%c7_115, %c0_116, %c0_117], %267 {strides = array<i32>} : memref<8x16x128xf32, #tpu.memory_space<vmem>>, vector<1x16x128xf32>,
    return
  }
  func.func @transform_0(%arg0: i32) -> (i32, i32) {
    %c0_i32 = arith.constant 0 : i32
    %c0_i32_0 = arith.constant 0 : i32
    return %arg0, %c0_i32 : i32, i32
  }
  func.func @transform_1(%arg0: i32) -> (i32, i32) {
    %c0_i32 = arith.constant 0 : i32
    %c0_i32_0 = arith.constant 0 : i32
    %c0_i32_1 = arith.constant 0 : i32
    return %c0_i32, %c0_i32_0 : i32, i32
  }
  func.func @transform_2(%arg0: i32) -> (i32, i32) {
    %c0_i32 = arith.constant 0 : i32
    %c0_i32_0 = arith.constant 0 : i32
    %c0_i32_1 = arith.constant 0 : i32
    return %c0_i32, %c0_i32_0 : i32, i32
  }
  func.func @transform_3(%arg0: i32) -> (i32, i32) {
    %c0_i32 = arith.constant 0 : i32
    %c0_i32_0 = arith.constant 0 : i32
    %c0_i32_1 = arith.constant 0 : i32
    return %c0_i32, %c0_i32_0 : i32, i32
  }
  func.func @transform_4(%arg0: i32) -> (i32, i32, i32) {
    %c0_i32 = arith.constant 0 : i32
    %c0_i32_0 = arith.constant 0 : i32
    %c0_i32_1 = arith.constant 0 : i32
    return %c0_i32, %arg0, %c0_i32_0 : i32, i32, i32
  }
  func.func @transform_5(%arg0: i32) -> (i32, i32, i32) {
    %c0_i32 = arith.constant 0 : i32
    %c0_i32_0 = arith.constant 0 : i32
    %c0_i32_1 = arith.constant 0 : i32
    return %c0_i32, %arg0, %c0_i32_0 : i32, i32, i32
  }
  func.func @transform_6(%arg0: i32) -> (i32, i32, i32) {
    %c0_i32 = arith.constant 0 : i32
    %c0_i32_0 = arith.constant 0 : i32
    %c0_i32_1 = arith.constant 0 : i32
    return %c0_i32, %arg0, %c0_i32_0 : i32, i32, i32
  }
}

</mosaic_0001>

<bundles_post_ra>
// kernel: tpu_custom_call.1
= control target key start
LH: loop header
LB: loop body
LE: loop exit
PB: predicated region body
PF: predicated region fallthrough
CT: control target
= control target key end

     0   :  { %12 = vsyncpa [#allocation3], 0  ;;  %s2310_s0 = inlined_call_operand.hbm [shape: f32[16,128], index: 0, kind: input, shape index: {}]   ;;  %s2311_s1 = inlined_call_operand.hbm [shape: bf16[128,256], index: 1, kind: input, shape index: {}]   ;;  %s2312_s2 = inlined_call_operand.hbm [shape: bf16[128,256], index: 2, kind: input, shape index: {}]   ;;  %s2313_s3 = inlined_call_operand.vmem [shape: f32[1,256], index: 3, kind: input, shape index: {}]   ;;  %s2314_s4 = inlined_call_operand.hbm [shape: bf16[8,16,128], index: 4, kind: input, shape index: {}]   ;;  %s2315_s5 = inlined_call_operand.hbm [shape: f32[8,16,128], index: 5, kind: output, shape index: {0}]   ;;  %s2316_s6 = inlined_call_operand.hbm [shape: f32[8,16,128], index: 6, kind: output, shape index: {1}]  }
   0x1   :  { %13 = vsyncpa [#allocation6], 0 }
   0x2   :  { %14 = vsyncpa [#allocation9], 0 }
   0x3   :  { %15 = vsyncpa [#allocation4], 0 }
   0x4   :  { %16 = vsyncpa [#allocation12], 0  ;;  %s34_s23 = sshll.u32 %s2311_s1, 4  ;;  %s1554_s24 = smov [#allocation5]   ;;  %s35_s23 = int_to_ptr.hbm [resolvable:$true] %s34_s23 }
   0x5   :  { %s36_s25 = sshll.u32 %s1554_s24, 4  ;;  %s21_s28 = sshll.u32 %s2310_s0, 4  ;;  %s37_s25 = int_to_ptr.vmem [resolvable:$true] %s36_s25  ;;  %s22_s28 = int_to_ptr.hbm [resolvable:$true] %s21_s28 }
   0x6   :  { %s1555_s29 = smov 128   ;;  %s1556_s30 = smov 8  }
   0x7   :  { %42 = dma.hbm_to_vmem [thread:$0]  %s35_s23, 2048, %s37_s25, [#allocation6], %s1555_s29, %s1555_s29, %s1556_s30  }
   0x8   :  { %s1557_s7 = smov [#allocation2]   ;;  %s47_s1 = sshll.u32 %s2312_s2, 4  ;;  %s48_s1 = int_to_ptr.hbm [resolvable:$true] %s47_s1 }
   0x9   :  { %s23_s8 = sshll.u32 %s1557_s7, 4  ;;  %s62_s12 = sshll.u32 %s2314_s4, 4  ;;  %s24_s8 = int_to_ptr.vmem [resolvable:$true] %s23_s8  ;;  %s63_s12 = int_to_ptr.hbm [resolvable:$true] %s62_s12 }
   0xa   :  { %29 = dma.hbm_to_vmem [thread:$0]  %s22_s28, 256, %s24_s8, [#allocation3], %s1555_s29, %s1555_s29, %s1556_s30  }
   0xb   :  { %s1558_s13 = smov [#allocation7]   ;;  %s1559_s15 = smov [#allocation8]  }
   0xc   :  { %s49_s14 = sshll.u32 %s1558_s13, 4  ;;  %s64_s2 = sshll.u32 %s1559_s15, 4  ;;  %s50_s14 = int_to_ptr.vmem [resolvable:$true] %s49_s14  ;;  %s65_s2 = int_to_ptr.vmem [resolvable:$true] %s64_s2 }
   0xd   :  { %55 = dma.hbm_to_vmem [thread:$0]  %s48_s1, 2048, %s50_s14, [#allocation6], %s1555_s29, %s1555_s29, %s1556_s30  }
   0xe   :  { %s1560_s16 = smov 64   ;;  %s1561_s17 = smov 4  }
   0xf   :  { %70 = dma.hbm_to_vmem [thread:$0]  %s63_s12, 1024, %s65_s2, [#allocation9], %s1560_s16, %s1560_s16, %s1561_s17  }
  0x10   :  { %1544 = dma.done.wait [#allocation3], 256  }
  0x11   :  { %1545 = vsyncadd [#allocation3], 4294967040 }
  0x12   :  { %1546 = dma.done.wait [#allocation6], 4096  }
  0x13   :  { %1547 = vsyncadd [#allocation6], 4294963200 }
  0x14   :  { %1548 = dma.done.wait [#allocation9], 1024  }
  0x15   :  { %1549 = vsyncadd [#allocation9], 4294966272  ;;  %v1188_v0 = vld [vmem:[#allocation5 + $0x70] sm:$0xf]  ;;  %v1301_v1 = vld [vmem:[#allocation5 + $0x74] sm:$0xf0] }
  0x16   :  { %v1180_v2 = vld [vmem:[#allocation5 + $0x60] sm:$0xf]  ;;  %v1620_v3 = vor.u32 %v1301_v1, %v1188_v0  ;;  %v1299_v4 = vld [vmem:[#allocation5 + $0x64] sm:$0xf0]  ;;  %v1172_v6 = vld [vmem:[#allocation5 + $0x50] sm:$0xf] }
  0x17   :  { %v1623_v5 = vor.u32 %v1299_v4, %v1180_v2  ;;  %v1297_v7 = vld [vmem:[#allocation5 + $0x54] sm:$0xf0]  ;;  %v1164_v9 = vld [vmem:[#allocation5 + $0x40] sm:$0xf]  ;;  %v1295_v10 = vld [vmem:[#allocation5 + $0x44] sm:$0xf0] }
  0x18   :  { %197 = vmatpush.bf16.msra.mxu0 %v1620_v3  ;;  %234 = vmatpush.bf16.msra.mxu2 %v1620_v3  ;;  %v1627_v8 = vor.u32 %v1297_v7, %v1172_v6  ;;  %v1631_v11 = vor.u32 %v1295_v10, %v1164_v9  ;;  %v1156_v12 = vld [vmem:[#allocation5 + $0x30] sm:$0xf]  ;;  %v1293_v13 = vld [vmem:[#allocation5 + $0x34] sm:$0xf0]  ;;  %v1148_v15 = vld [vmem:[#allocation5 + $0x20] sm:$0xf] }
  0x19   :  { %v1635_v14 = vor.u32 %v1293_v13, %v1156_v12  ;;  %v1291_v16 = vld [vmem:[#allocation5 + $0x24] sm:$0xf0]  ;;  %v1140_v18 = vld [vmem:[#allocation5 + $0x10] sm:$0xf]  ;;  %v1289_v19 = vld [vmem:[#allocation5 + $0x14] sm:$0xf0] }
  0x1a   :  { %v1639_v17 = vor.u32 %v1291_v16, %v1148_v15  ;;  %v1643_v20 = vor.u32 %v1289_v19, %v1140_v18  ;;  %v1132_v21 = vld [vmem:[#allocation5] sm:$0xf]  ;;  %v1287_v22 = vld [vmem:[#allocation5 + $0x4] sm:$0xf0]  ;;  %v1669_v25 = vld [vmem:[#allocation8 + $0x10] sm:$0xff]  ;;  %s1093_s22 = sshll.u32 %s2315_s5, 4  ;;  %s1094_s22 = int_to_ptr.hbm [resolvable:$true] %s1093_s22 }
  0x1b   :  { %v1647_v23 = vor.u32 %v1287_v22, %v1132_v21  ;;  %v1650_v24 = vld [vmem:[#allocation8] sm:$0xff]  ;;  %v1300_v27 = vld [vmem:[#allocation5 + $0x74] sm:$0xf]  ;;  %v1190_v28 = vld [vmem:[#allocation5 + $0x78] sm:$0xf0]  ;;  %s1563_s5 = smov [#allocation11]  }
  0x1c   :  { %198 = vmatpush.bf16.msra.mxu0 %v1623_v5  ;;  %235 = vmatpush.bf16.msra.mxu2 %v1623_v5  ;;  %v1681_v26 = vld [vmem:[#allocation8 + $0x20] sm:$0xff]  ;;  %v1690_v29 = vor.u32 %v1300_v27, %v1190_v28  ;;  %v1182_v31 = vld [vmem:[#allocation5 + $0x68] sm:$0xf0]  ;;  %v1280_v33 = vld [vmem:[#allocation7 + $0x70] sm:$0xf]  ;;  %s1104_s23 = sshll.u32 %s1563_s5, 4  ;;  %s1105_s23 = int_to_ptr.vmem [resolvable:$true] %s1104_s23 }
  0x1d   :  { %v1298_v30 = vld [vmem:[#allocation5 + $0x64] sm:$0xf]  ;;  %v1325_v34 = vld [vmem:[#allocation7 + $0x74] sm:$0xf0]  ;;  %v1296_v35 = vld [vmem:[#allocation5 + $0x54] sm:$0xf] }
  0x1e   :  { %248 = vmatpush.bf16.msra.mxu3 %v1690_v29  ;;  %211 = vmatpush.bf16.msra.mxu1 %v1690_v29  ;;  %v1695_v32 = vor.u32 %v1298_v30, %v1182_v31  ;;  %v1174_v36 = vld [vmem:[#allocation5 + $0x58] sm:$0xf0]  ;;  %v1700_v37 = vor.u32 %v1325_v34, %v1280_v33  ;;  %v1272_v39 = vld [vmem:[#allocation7 + $0x60] sm:$0xf]  ;;  %v1323_v40 = vld [vmem:[#allocation7 + $0x64] sm:$0xf0] }
  0x1f   :  { %v1702_v38 = vor.u32 %v1296_v35, %v1174_v36  ;;  %v1704_v41 = vld [vmem:[#allocation8 + $0x30] sm:$0xff]  ;;  %v1294_v42 = vld [vmem:[#allocation5 + $0x44] sm:$0xf]  ;;  %v1166_v43 = vld [vmem:[#allocation5 + $0x48] sm:$0xf0]  ;;  %v1710_v45 = vor.u32 %v1323_v40, %v1272_v39  ;;  %s1106_s26 = sshll.u32 %s2316_s6, 4  ;;  %s1107_s26 = int_to_ptr.hbm [resolvable:$true] %s1106_s26 }
  0x20   :  { %199 = vmatpush.bf16.msra.mxu0 %v1627_v8  ;;  %236 = vmatpush.bf16.msra.mxu2 %v1627_v8  ;;  %v1292_v44 = vld [vmem:[#allocation5 + $0x34] sm:$0xf]  ;;  %v1712_v46 = vor.u32 %v1294_v42, %v1166_v43  ;;  %v1158_v47 = vld [vmem:[#allocation5 + $0x38] sm:$0xf0]  ;;  %v1264_v48 = vld [vmem:[#allocation7 + $0x50] sm:$0xf] }
  0x21   :  { %v1321_v49 = vld [vmem:[#allocation7 + $0x54] sm:$0xf0]  ;;  %v1716_v50 = vor.u32 %v1292_v44, %v1158_v47  ;;  %v1290_v51 = vld [vmem:[#allocation5 + $0x24] sm:$0xf]  ;;  %v1150_v52 = vld [vmem:[#allocation5 + $0x28] sm:$0xf0] }
  0x22   :  { %249 = vmatpush.bf16.msra.mxu3 %v1695_v32  ;;  %212 = vmatpush.bf16.msra.mxu1 %v1695_v32  ;;  %v1720_v53 = vor.u32 %v1321_v49, %v1264_v48  ;;  %v1256_v54 = vld [vmem:[#allocation7 + $0x40] sm:$0xf]  ;;  %v1319_v55 = vld [vmem:[#allocation7 + $0x44] sm:$0xf0]  ;;  %v1723_v56 = vor.u32 %v1290_v51, %v1150_v52  ;;  %v1288_v57 = vld [vmem:[#allocation5 + $0x14] sm:$0xf] }
  0x23   :  { %v1142_v58 = vld [vmem:[#allocation5 + $0x18] sm:$0xf0]  ;;  %v1727_v59 = vor.u32 %v1319_v55, %v1256_v54  ;;  %v1248_v60 = vld [vmem:[#allocation7 + $0x30] sm:$0xf]  ;;  %v1317_v61 = vld [vmem:[#allocation7 + $0x34] sm:$0xf0] }
  0x24   :  { %200 = vmatpush.bf16.msra.mxu0 %v1631_v11  ;;  %237 = vmatpush.bf16.msra.mxu2 %v1631_v11  ;;  %v1730_v62 = vor.u32 %v1288_v57, %v1142_v58  ;;  %v1286_v63 = vld [vmem:[#allocation5 + $0x4] sm:$0xf]  ;;  %v1134_v0 = vld [vmem:[#allocation5 + $0x8] sm:$0xf0]  ;;  %v1734_v1 = vor.u32 %v1317_v61, %v1248_v60  ;;  %v1240_v2 = vld [vmem:[#allocation7 + $0x20] sm:$0xf] }
  0x25   :  { %v1315_v4 = vld [vmem:[#allocation7 + $0x24] sm:$0xf0]  ;;  %v1737_v6 = vor.u32 %v1286_v63, %v1134_v0  ;;  %v1232_v9 = vld [vmem:[#allocation7 + $0x10] sm:$0xf]  ;;  %v1313_v10 = vld [vmem:[#allocation7 + $0x14] sm:$0xf0] }
  0x26   :  { %250 = vmatpush.bf16.msra.mxu3 %v1702_v38  ;;  %213 = vmatpush.bf16.msra.mxu1 %v1702_v38  ;;  %v1741_v7 = vor.u32 %v1315_v4, %v1240_v2  ;;  %v1303_v12 = vld [vmem:[#allocation8 + $0x8] sm:$0xff]  ;;  %v1746_v13 = vor.u32 %v1313_v10, %v1232_v9  ;;  %v1224_v15 = vld [vmem:[#allocation7] sm:$0xf]  ;;  %v500_v19 = vld [vmem:[#allocation2] sm:$0xff] }
  0x27   :  { %v1311_v16 = vld [vmem:[#allocation7 + $0x4] sm:$0xf0]  ;;  %v501_v21 = vld [vmem:[#allocation2 + $0x8] sm:$0xff]  ;;  %v1320_v28 = vld [vmem:[#allocation7 + $0x54] sm:$0xf] }
  0x28   :  { %201 = vmatpush.bf16.msra.mxu0 %v1635_v14  ;;  %238 = vmatpush.bf16.msra.mxu2 %v1635_v14  ;;  %v1753_v18 = vor.u32 %v1311_v16, %v1224_v15  ;;  %v1758_v22 = vpack.c.bf16 %v501_v21, %v500_v19  ;;  %v1258_v33 = vld [vmem:[#allocation7 + $0x48] sm:$0xf0]  ;;  %v1316_v35 = vld [vmem:[#allocation7 + $0x34] sm:$0xf]  ;;  %v1250_v36 = vld [vmem:[#allocation7 + $0x38] sm:$0xf0] }
  0x29   :  { %v1874_v39 = vor.u32 %v1316_v35, %v1250_v36  ;;  %v1314_v40 = vld [vmem:[#allocation7 + $0x24] sm:$0xf]  ;;  %v1312_v43 = vld [vmem:[#allocation7 + $0x14] sm:$0xf]  ;;  %v1234_v44 = vld [vmem:[#allocation7 + $0x18] sm:$0xf0] }
  0x2a   :  { %251 = vmatpush.bf16.msra.mxu3 %v1712_v46  ;;  %214 = vmatpush.bf16.msra.mxu1 %v1712_v46  ;;  %v1887_v47 = vor.u32 %v1312_v43, %v1234_v44  ;;  %v1310_v48 = vld [vmem:[#allocation7 + $0x4] sm:$0xf]  ;;  %v1226_v49 = vld [vmem:[#allocation7 + $0x8] sm:$0xf0]  ;;  %v1912_v52 = vld [vmem:[%s2313_s3] sm:$0x3] }
  0x2b   :  { %v1917_v55 = vperm.slane %v1912_v52, 0  ;;  %s1562_s3 = smov [#allocation10]  }
  0x2c   :  { %202 = vmatpush.bf16.msra.mxu0 %v1639_v17  ;;  %239 = vmatpush.bf16.msra.mxu2 %v1639_v17  ;;  %s1091_s19 = sshll.u32 %s1562_s3, 4  ;;  %s1092_s19 = int_to_ptr.vmem [resolvable:$true] %s1091_s19 }
  0x2e   :  { %252 = vmatpush.bf16.msra.mxu3 %v1716_v50  ;;  %215 = vmatpush.bf16.msra.mxu1 %v1716_v50 }
  0x30   :  { %203 = vmatpush.bf16.msra.mxu0 %v1643_v20  ;;  %240 = vmatpush.bf16.msra.mxu2 %v1643_v20 }
  0x32   :  { %253 = vmatpush.bf16.msra.mxu3 %v1723_v56  ;;  %216 = vmatpush.bf16.msra.mxu1 %v1723_v56 }
  0x34   :  { %204 = vmatpush.bf16.msra.mxu0 %v1647_v23  ;;  %241 = vmatpush.bf16.msra.mxu2 %v1647_v23 }
  0x36   :  { %254 = vmatpush.bf16.msra.mxu3 %v1730_v62  ;;  %217 = vmatpush.bf16.msra.mxu1 %v1730_v62 }
  0x37   :  { %205 = vmatmul.bf16.vlgmr.msra.gmra.mxu0 %v1650_v24  ;;  %242 = vmatmul.bf16.vlgmr.msra.gmra.mxu2 %v1303_v12 }
  0x38   :  { %271 = vmatpush.bf16.msrb.mxu0 %v1620_v3  ;;  %308 = vmatpush.bf16.msrb.mxu2 %v1620_v3 }
  0x3a   :  { %255 = vmatpush.bf16.msra.mxu3 %v1737_v6  ;;  %218 = vmatpush.bf16.msra.mxu1 %v1737_v6 }
  0x3c   :  { %272 = vmatpush.bf16.msrb.mxu0 %v1623_v5  ;;  %309 = vmatpush.bf16.msrb.mxu2 %v1623_v5 }
  0x3d   :  { %256 = vmatmul.bf16.vlgmr.msra.gmra.mxu3 %v1303_v12  ;;  %219 = vmatmul.bf16.vlgmr.msra.gmra.mxu1 %v1650_v24  ;;  %v1305_v24 = vld [vmem:[#allocation8 + $0x18] sm:$0xff] }
  0x3e   :  { %322 = vmatpush.bf16.msrb.mxu3 %v1690_v29  ;;  %285 = vmatpush.bf16.msrb.mxu1 %v1690_v29 }
  0x40   :  { %273 = vmatpush.bf16.msrb.mxu0 %v1627_v8  ;;  %310 = vmatpush.bf16.msrb.mxu2 %v1627_v8 }
  0x42   :  { %323 = vmatpush.bf16.msrb.mxu3 %v1695_v32  ;;  %286 = vmatpush.bf16.msrb.mxu1 %v1695_v32 }
  0x44   :  { %274 = vmatpush.bf16.msrb.mxu0 %v1631_v11  ;;  %311 = vmatpush.bf16.msrb.mxu2 %v1631_v11 }
  0x46   :  { %324 = vmatpush.bf16.msrb.mxu3 %v1702_v38  ;;  %287 = vmatpush.bf16.msrb.mxu1 %v1702_v38 }
  0x48   :  { %275 = vmatpush.bf16.msrb.mxu0 %v1635_v14  ;;  %312 = vmatpush.bf16.msrb.mxu2 %v1635_v14 }
  0x4a   :  { %325 = vmatpush.bf16.msrb.mxu3 %v1712_v46  ;;  %288 = vmatpush.bf16.msrb.mxu1 %v1712_v46 }
  0x4c   :  { %276 = vmatpush.bf16.msrb.mxu0 %v1639_v17  ;;  %313 = vmatpush.bf16.msrb.mxu2 %v1639_v17 }
  0x4e   :  { %326 = vmatpush.bf16.msrb.mxu3 %v1716_v50  ;;  %289 = vmatpush.bf16.msrb.mxu1 %v1716_v50 }
  0x50   :  { %277 = vmatpush.bf16.msrb.mxu0 %v1643_v20  ;;  %314 = vmatpush.bf16.msrb.mxu2 %v1643_v20 }
  0x52   :  { %327 = vmatpush.bf16.msrb.mxu3 %v1723_v56  ;;  %290 = vmatpush.bf16.msrb.mxu1 %v1723_v56 }
  0x54   :  { %278 = vmatpush.bf16.msrb.mxu0 %v1647_v23  ;;  %315 = vmatpush.bf16.msrb.mxu2 %v1647_v23 }
  0x56   :  { %328 = vmatpush.bf16.msrb.mxu3 %v1730_v62  ;;  %291 = vmatpush.bf16.msrb.mxu1 %v1730_v62 }
  0x57   :  { %279 = vmatmul.bf16.vlgmr.msrb.gmra.mxu0 %v1669_v25  ;;  %316 = vmatmul.bf16.vlgmr.msrb.gmra.mxu2 %v1305_v24 }
  0x58   :  { %345 = vmatpush.bf16.msra.mxu0 %v1620_v3  ;;  %382 = vmatpush.bf16.msra.mxu2 %v1620_v3 }
  0x5a   :  { %329 = vmatpush.bf16.msrb.mxu3 %v1737_v6  ;;  %292 = vmatpush.bf16.msrb.mxu1 %v1737_v6 }
  0x5c   :  { %346 = vmatpush.bf16.msra.mxu0 %v1623_v5  ;;  %383 = vmatpush.bf16.msra.mxu2 %v1623_v5 }
  0x5d   :  { %330 = vmatmul.bf16.vlgmr.msrb.gmra.mxu3 %v1305_v24  ;;  %293 = vmatmul.bf16.vlgmr.msrb.gmra.mxu1 %v1669_v25  ;;  %v1274_v25 = vld [vmem:[#allocation7 + $0x68] sm:$0xf0] }
  0x5e   :  { %396 = vmatpush.bf16.msra.mxu3 %v1690_v29  ;;  %359 = vmatpush.bf16.msra.mxu1 %v1690_v29 }
  0x60   :  { %347 = vmatpush.bf16.msra.mxu0 %v1627_v8  ;;  %384 = vmatpush.bf16.msra.mxu2 %v1627_v8 }
  0x62   :  { %397 = vmatpush.bf16.msra.mxu3 %v1695_v32  ;;  %360 = vmatpush.bf16.msra.mxu1 %v1695_v32 }
  0x64   :  { %348 = vmatpush.bf16.msra.mxu0 %v1631_v11  ;;  %385 = vmatpush.bf16.msra.mxu2 %v1631_v11 }
  0x66   :  { %398 = vmatpush.bf16.msra.mxu3 %v1702_v38  ;;  %361 = vmatpush.bf16.msra.mxu1 %v1702_v38 }
  0x68   :  { %349 = vmatpush.bf16.msra.mxu0 %v1635_v14  ;;  %386 = vmatpush.bf16.msra.mxu2 %v1635_v14 }
  0x6a   :  { %399 = vmatpush.bf16.msra.mxu3 %v1712_v46  ;;  %362 = vmatpush.bf16.msra.mxu1 %v1712_v46 }
  0x6c   :  { %350 = vmatpush.bf16.msra.mxu0 %v1639_v17  ;;  %387 = vmatpush.bf16.msra.mxu2 %v1639_v17 }
  0x6e   :  { %400 = vmatpush.bf16.msra.mxu3 %v1716_v50  ;;  %363 = vmatpush.bf16.msra.mxu1 %v1716_v50 }
  0x70   :  { %351 = vmatpush.bf16.msra.mxu0 %v1643_v20  ;;  %388 = vmatpush.bf16.msra.mxu2 %v1643_v20 }
  0x72   :  { %401 = vmatpush.bf16.msra.mxu3 %v1723_v56  ;;  %364 = vmatpush.bf16.msra.mxu1 %v1723_v56 }
  0x74   :  { %352 = vmatpush.bf16.msra.mxu0 %v1647_v23  ;;  %389 = vmatpush.bf16.msra.mxu2 %v1647_v23 }
  0x76   :  { %402 = vmatpush.bf16.msra.mxu3 %v1730_v62  ;;  %365 = vmatpush.bf16.msra.mxu1 %v1730_v62 }
  0x77   :  { %353 = vmatmul.bf16.vlgmr.msra.gmra.mxu0 %v1681_v26 }
  0x78   :  { %419 = vmatpush.bf16.msrb.mxu0 %v1620_v3  ;;  %456 = vmatpush.bf16.msrb.mxu2 %v1620_v3  ;;  %v1307_v3 = vld [vmem:[#allocation8 + $0x28] sm:$0xff] }
  0x79   :  { %390 = vmatmul.bf16.vlgmr.msra.gmra.mxu2 %v1307_v3 }
  0x7a   :  { %403 = vmatpush.bf16.msra.mxu3 %v1737_v6  ;;  %366 = vmatpush.bf16.msra.mxu1 %v1737_v6 }
  0x7c   :  { %420 = vmatpush.bf16.msrb.mxu0 %v1623_v5  ;;  %457 = vmatpush.bf16.msrb.mxu2 %v1623_v5 }
  0x7d   :  { %404 = vmatmul.bf16.vlgmr.msra.gmra.mxu3 %v1307_v3  ;;  %367 = vmatmul.bf16.vlgmr.msra.gmra.mxu1 %v1681_v26  ;;  %v1309_v26 = vld [vmem:[#allocation8 + $0x38] sm:$0xff] }
  0x7e   :  { %470 = vmatpush.bf16.msrb.mxu3 %v1690_v29  ;;  %433 = vmatpush.bf16.msrb.mxu1 %v1690_v29  ;;  %v1266_v29 = vld [vmem:[#allocation7 + $0x58] sm:$0xf0] }
  0x7f   :  { %v1861_v31 = vor.u32 %v1320_v28, %v1266_v29 }
  0x80   :  { %421 = vmatpush.bf16.msrb.mxu0 %v1627_v8  ;;  %458 = vmatpush.bf16.msrb.mxu2 %v1627_v8 }
  0x82   :  { %471 = vmatpush.bf16.msrb.mxu3 %v1695_v32  ;;  %434 = vmatpush.bf16.msrb.mxu1 %v1695_v32  ;;  %v1318_v32 = vld [vmem:[#allocation7 + $0x44] sm:$0xf] }
  0x83   :  { %v1867_v34 = vor.u32 %v1318_v32, %v1258_v33 }
  0x84   :  { %422 = vmatpush.bf16.msrb.mxu0 %v1631_v11  ;;  %459 = vmatpush.bf16.msrb.mxu2 %v1631_v11  ;;  %v1324_v11 = vld [vmem:[#allocation7 + $0x74] sm:$0xf] }
  0x86   :  { %472 = vmatpush.bf16.msrb.mxu3 %v1702_v38  ;;  %435 = vmatpush.bf16.msrb.mxu1 %v1702_v38 }
  0x88   :  { %423 = vmatpush.bf16.msrb.mxu0 %v1635_v14  ;;  %460 = vmatpush.bf16.msrb.mxu2 %v1635_v14  ;;  %v1282_v14 = vld [vmem:[#allocation7 + $0x78] sm:$0xf0] }
  0x8a   :  { %473 = vmatpush.bf16.msrb.mxu3 %v1712_v46  ;;  %436 = vmatpush.bf16.msrb.mxu1 %v1712_v46 }
  0x8c   :  { %424 = vmatpush.bf16.msrb.mxu0 %v1639_v17  ;;  %461 = vmatpush.bf16.msrb.mxu2 %v1639_v17 }
  0x8e   :  { %474 = vmatpush.bf16.msrb.mxu3 %v1716_v50  ;;  %437 = vmatpush.bf16.msrb.mxu1 %v1716_v50  ;;  %v1892_v50 = vor.u32 %v1310_v48, %v1226_v49 }
  0x90   :  { %425 = vmatpush.bf16.msrb.mxu0 %v1643_v20  ;;  %462 = vmatpush.bf16.msrb.mxu2 %v1643_v20  ;;  %v1847_v20 = vor.u32 %v1324_v11, %v1282_v14  ;;  %v615_v11 = vlaneseq  ;;  %v1981_v14 = vperm.slane %v1912_v52, 1 }
  0x92   :  { %475 = vmatpush.bf16.msrb.mxu3 %v1723_v56  ;;  %438 = vmatpush.bf16.msrb.mxu1 %v1723_v56 }
  0x94   :  { %426 = vmatpush.bf16.msrb.mxu0 %v1647_v23  ;;  %463 = vmatpush.bf16.msrb.mxu2 %v1647_v23  ;;  %v1322_v23 = vld [vmem:[#allocation7 + $0x64] sm:$0xf] }
  0x95   :  { %v1853_v27 = vor.u32 %v1322_v23, %v1274_v25  ;;  %v1983_v23 = vand.u32 127, %v615_v11 }
  0x96   :  { %476 = vmatpush.bf16.msrb.mxu3 %v1730_v62  ;;  %439 = vmatpush.bf16.msrb.mxu1 %v1730_v62 }
  0x97   :  { %427 = vmatmul.bf16.vlgmr.msrb.gmra.mxu0 %v1704_v41  ;;  %464 = vmatmul.bf16.vlgmr.msrb.gmra.mxu2 %v1309_v26  ;;  %vm617_vm0 = vcmp.lt.s32.totalorder %v1983_v23, 18 }
  0x98   :  { %583 = vmatpush.bf16.msra.mxu0 %v1700_v37  ;;  %647 = vmatpush.bf16.msra.mxu2 %v1700_v37 }
  0x9a   :  { %477 = vmatpush.bf16.msrb.mxu3 %v1737_v6  ;;  %440 = vmatpush.bf16.msrb.mxu1 %v1737_v6 }
  0x9c   :  { %584 = vmatpush.bf16.msra.mxu0 %v1710_v45  ;;  %648 = vmatpush.bf16.msra.mxu2 %v1710_v45 }
  0x9d   :  { %478 = vmatmul.bf16.vlgmr.msrb.gmra.mxu3 %v1309_v26  ;;  %441 = vmatmul.bf16.vlgmr.msrb.gmra.mxu1 %v1704_v41  ;;  %v1242_v41 = vld [vmem:[#allocation7 + $0x28] sm:$0xf0] }
  0x9e   :  { %661 = vmatpush.bf16.msra.mxu3 %v1847_v20  ;;  %597 = vmatpush.bf16.msra.mxu1 %v1847_v20  ;;  %v1880_v42 = vor.u32 %v1314_v40, %v1242_v41 }
  0xa0   :  { %585 = vmatpush.bf16.msra.mxu0 %v1720_v53  ;;  %649 = vmatpush.bf16.msra.mxu2 %v1720_v53 }
  0xa2   :  { %662 = vmatpush.bf16.msra.mxu3 %v1853_v27  ;;  %598 = vmatpush.bf16.msra.mxu1 %v1853_v27 }
  0xa4   :  { %586 = vmatpush.bf16.msra.mxu0 %v1727_v59  ;;  %650 = vmatpush.bf16.msra.mxu2 %v1727_v59 }
  0xa6   :  { %663 = vmatpush.bf16.msra.mxu3 %v1861_v31  ;;  %599 = vmatpush.bf16.msra.mxu1 %v1861_v31 }
  0xa8   :  { %587 = vmatpush.bf16.msra.mxu0 %v1734_v1  ;;  %651 = vmatpush.bf16.msra.mxu2 %v1734_v1 }
  0xaa   :  { %664 = vmatpush.bf16.msra.mxu3 %v1867_v34  ;;  %600 = vmatpush.bf16.msra.mxu1 %v1867_v34 }
  0xac   :  { %588 = vmatpush.bf16.msra.mxu0 %v1741_v7  ;;  %652 = vmatpush.bf16.msra.mxu2 %v1741_v7 }
  0xae   :  { %665 = vmatpush.bf16.msra.mxu3 %v1874_v39  ;;  %601 = vmatpush.bf16.msra.mxu1 %v1874_v39 }
  0xb0   :  { %589 = vmatpush.bf16.msra.mxu0 %v1746_v13  ;;  %653 = vmatpush.bf16.msra.mxu2 %v1746_v13 }
  0xb2   :  { %666 = vmatpush.bf16.msra.mxu3 %v1880_v42  ;;  %602 = vmatpush.bf16.msra.mxu1 %v1880_v42 }
  0xb4   :  { %590 = vmatpush.bf16.msra.mxu0 %v1753_v18  ;;  %v1823_v5 = vpop.f32.mrf.mxu0  ;;  %654 = vmatpush.bf16.msra.mxu2 %v1753_v18 }
  0xb5   :  { %v207_v56 = vadd.f32 %v1823_v5, %v1917_v55 }
  0xb6   :  { %667 = vmatpush.bf16.msra.mxu3 %v1887_v47  ;;  %603 = vmatpush.bf16.msra.mxu1 %v1887_v47 }
  0xb7   :  { %591 = vmatmul.bf16.vlgmr.msra.gmra.mxu0 %v1758_v22 }
  0xb8   :  { %710 = vmatpush.bf16.msrb.mxu0 %v1700_v37  ;;  %773 = vmatpush.bf16.msrb.mxu2 %v1700_v37 }
  0xba   :  { %668 = vmatpush.bf16.msra.mxu3 %v1892_v50  ;;  %604 = vmatpush.bf16.msra.mxu1 %v1892_v50  ;;  %v243_v2 = vpop.f32.mrf.mxu2  ;;  %v220_v49 = vpop.f32.mrf.mxu1 }
  0xbb   :  { %v244_v26 = vadd.f32 %v243_v2, %v1917_v55  ;;  %v221_v2 = vadd.f32 %v220_v49, %v1981_v14 }
  0xbc   :  { %711 = vmatpush.bf16.msrb.mxu0 %v1710_v45  ;;  %v1835_v8 = vpop.f32.mrf.mxu0  ;;  %774 = vmatpush.bf16.msrb.mxu2 %v1710_v45 }
  0xbd   :  { %605 = vmatmul.bf16.vlgmr.msra.gmra.mxu1 %v1758_v22  ;;  %v209_v60 = vadd.f32 %v1835_v8, %v1917_v55 }
  0xbe   :  { %787 = vmatpush.bf16.msrb.mxu3 %v1847_v20  ;;  %724 = vmatpush.bf16.msrb.mxu1 %v1847_v20 }
  0xc0   :  { %712 = vmatpush.bf16.msrb.mxu0 %v1720_v53  ;;  %775 = vmatpush.bf16.msrb.mxu2 %v1720_v53  ;;  %v257_v0 = vpop.f32.mrf.mxu3 }
  0xc1   :  { %v258_v25 = vadd.f32 %v257_v0, %v1981_v14 }
  0xc2   :  { %788 = vmatpush.bf16.msrb.mxu3 %v1853_v27  ;;  %725 = vmatpush.bf16.msrb.mxu1 %v1853_v27  ;;  %v245_v6 = vpop.f32.mrf.mxu2 }
  0xc3   :  { %v246_v40 = vadd.f32 %v245_v6, %v1917_v55 }
  0xc4   :  { %713 = vmatpush.bf16.msrb.mxu0 %v1727_v59  ;;  %776 = vmatpush.bf16.msrb.mxu2 %v1727_v59 }
  0xc6   :  { %789 = vmatpush.bf16.msrb.mxu3 %v1861_v31  ;;  %726 = vmatpush.bf16.msrb.mxu1 %v1861_v31 }
  0xc8   :  { %714 = vmatpush.bf16.msrb.mxu0 %v1734_v1  ;;  %777 = vmatpush.bf16.msrb.mxu2 %v1734_v1  ;;  %v259_v4 = vpop.f32.mrf.mxu3 }
  0xc9   :  { %v260_v36 = vadd.f32 %v259_v4, %v1981_v14 }
  0xca   :  { %790 = vmatpush.bf16.msrb.mxu3 %v1867_v34  ;;  %727 = vmatpush.bf16.msrb.mxu1 %v1867_v34 }
  0xcc   :  { %715 = vmatpush.bf16.msrb.mxu0 %v1741_v7  ;;  %778 = vmatpush.bf16.msrb.mxu2 %v1741_v7 }
  0xce   :  { %791 = vmatpush.bf16.msrb.mxu3 %v1874_v39  ;;  %728 = vmatpush.bf16.msrb.mxu1 %v1874_v39 }
  0xd0   :  { %716 = vmatpush.bf16.msrb.mxu0 %v1746_v13  ;;  %779 = vmatpush.bf16.msrb.mxu2 %v1746_v13 }
  0xd2   :  { %792 = vmatpush.bf16.msrb.mxu3 %v1880_v42  ;;  %729 = vmatpush.bf16.msrb.mxu1 %v1880_v42 }
  0xd4   :  { %717 = vmatpush.bf16.msrb.mxu0 %v1753_v18  ;;  %v1843_v17 = vpop.f32.mrf.mxu0  ;;  %780 = vmatpush.bf16.msrb.mxu2 %v1753_v18 }
  0xd6   :  { %793 = vmatpush.bf16.msrb.mxu3 %v1887_v47  ;;  %730 = vmatpush.bf16.msrb.mxu1 %v1887_v47 }
  0xd8   :  { %836 = vmatpush.bf16.msra.mxu0 %v1700_v37 }
  0xda   :  { %794 = vmatpush.bf16.msrb.mxu3 %v1892_v50  ;;  %731 = vmatpush.bf16.msrb.mxu1 %v1892_v50  ;;  %v1958_v10 = vpop.f32.mrf.mxu2 }
  0xdc   :  { %837 = vmatpush.bf16.msra.mxu0 %v1710_v45  ;;  %v1858_v30 = vpop.f32.mrf.mxu0 }
  0xdd   :  { %v283_v49 = vadd.f32 %v1858_v30, %v1917_v55 }
  0xde   :  { %850 = vmatpush.bf16.msra.mxu1 %v1847_v20 }
  0xe0   :  { %838 = vmatpush.bf16.msra.mxu0 %v1720_v53  ;;  %v1956_v9 = vpop.f32.mrf.mxu3 }
  0xe2   :  { %851 = vmatpush.bf16.msra.mxu1 %v1853_v27  ;;  %v1962_v15 = vpop.f32.mrf.mxu2 }
  0xe3   :  { %v320_v30 = vadd.f32 %v1962_v15, %v1917_v55 }
  0xe4   :  { %839 = vmatpush.bf16.msra.mxu0 %v1727_v59 }
  0xe6   :  { %852 = vmatpush.bf16.msra.mxu1 %v1861_v31 }
  0xe8   :  { %840 = vmatpush.bf16.msra.mxu0 %v1734_v1  ;;  %v1960_v12 = vpop.f32.mrf.mxu3 }
  0xea   :  { %853 = vmatpush.bf16.msra.mxu1 %v1867_v34 }
  0xec   :  { %841 = vmatpush.bf16.msra.mxu0 %v1741_v7 }
  0xee   :  { %854 = vmatpush.bf16.msra.mxu1 %v1874_v39 }
  0xf0   :  { %842 = vmatpush.bf16.msra.mxu0 %v1746_v13 }
  0xf2   :  { %855 = vmatpush.bf16.msra.mxu1 %v1880_v42 }
  0xf4   :  { %843 = vmatpush.bf16.msra.mxu0 %v1753_v18  ;;  %v1871_v38 = vpop.f32.mrf.mxu0 }
  0xf6   :  { %856 = vmatpush.bf16.msra.mxu1 %v1887_v47 }
  0xfa   :  { %857 = vmatpush.bf16.msra.mxu1 %v1892_v50 }
  0xfc   :  { %v1885_v46 = vpop.f32.mrf.mxu0  ;;  %v1966_v19 = vpop.f32.mrf.mxu2 }
 0x100   :  { %v1964_v16 = vpop.f32.mrf.mxu3 }
 0x104   :  { %v1970_v22 = vpop.f32.mrf.mxu2 }
 0x108   :  { %v1968_v21 = vpop.f32.mrf.mxu3 }
 0x114   :  { %v1899_v51 = vpop.f32.mrf.mxu0 }
 0x11a   :  { %v1974_v3 = vpop.f32.mrf.mxu2 }
 0x11c   :  { %v1914_v54 = vpop.f32.mrf.mxu0 }
 0x120   :  { %v1972_v24 = vpop.f32.mrf.mxu3 }
 0x122   :  { %v1978_v8 = vpop.f32.mrf.mxu2 }
 0x128   :  { %v1976_v5 = vpop.f32.mrf.mxu3 }
 0x134   :  { %v592_v57 = vpop.f32.mrf.mxu0 }
 0x135   :  { %v611_v58 = vadd.f32 %v592_v57, %v207_v56  ;;  %v222_v57 = vpop.f32.mrf.mxu1 }
 0x136   :  { %v223_v11 = vadd.f32 %v222_v57, %v1981_v14 }
 0x137   :  { %642 = vst [vmem:[#allocation10] sm:$0xff] %v611_v58 }
 0x13c   :  { %v594_v61 = vpop.f32.mrf.mxu0 }
 0x13d   :  { %v613_v62 = vadd.f32 %v594_v61, %v209_v60 }
 0x13f   :  { %643 = vst [vmem:[#allocation10 + $0x8] sm:$0xff] %v613_v62  ;;  %v646_v63 = vpack.c.bf16 %v613_v62, %v611_v58  ;;  %v294_v58 = vpop.f32.mrf.mxu1 }
 0x141   :  { %655 = vmatmul.bf16.vlgmr.msra.gmra.mxu2 %v646_v63  ;;  %669 = vmatmul.bf16.vlgmr.msra.gmra.mxu3 %v646_v63 }
 0x142   :  { %899 = vmatpush.bf16.msra.mxu2 %v1700_v37  ;;  %913 = vmatpush.bf16.msra.mxu3 %v1847_v20 }
 0x146   :  { %900 = vmatpush.bf16.msra.mxu2 %v1710_v45  ;;  %914 = vmatpush.bf16.msra.mxu3 %v1853_v27 }
 0x147   :  { %v296_v60 = vpop.f32.mrf.mxu1 }
 0x14a   :  { %901 = vmatpush.bf16.msra.mxu2 %v1720_v53  ;;  %915 = vmatpush.bf16.msra.mxu3 %v1861_v31 }
 0x14e   :  { %902 = vmatpush.bf16.msra.mxu2 %v1727_v59  ;;  %916 = vmatpush.bf16.msra.mxu3 %v1867_v34 }
 0x14f   :  { %v2022_v61 = vpop.f32.mrf.mxu1 }
 0x152   :  { %903 = vmatpush.bf16.msra.mxu2 %v1734_v1  ;;  %917 = vmatpush.bf16.msra.mxu3 %v1874_v39 }
 0x156   :  { %904 = vmatpush.bf16.msra.mxu2 %v1741_v7  ;;  %918 = vmatpush.bf16.msra.mxu3 %v1880_v42 }
 0x157   :  { %v2024_v62 = vpop.f32.mrf.mxu1 }
 0x15a   :  { %905 = vmatpush.bf16.msra.mxu2 %v1746_v13  ;;  %919 = vmatpush.bf16.msra.mxu3 %v1887_v47 }
 0x15e   :  { %906 = vmatpush.bf16.msra.mxu2 %v1753_v18  ;;  %920 = vmatpush.bf16.msra.mxu3 %v1892_v50 }
 0x15f   :  { %v2026_v63 = vpop.f32.mrf.mxu1 }
 0x167   :  { %v2028_v0 = vpop.f32.mrf.mxu1 }
 0x16f   :  { %v606_v4 = vpop.f32.mrf.mxu1 }
 0x170   :  { %v2031_v6 = vadd.f32 %v606_v4, %v221_v2 }
 0x1c4   :  { %v656_v28 = vpop.f32.mrf.mxu2  ;;  %v670_v29 = vpop.f32.mrf.mxu3 }
 0x1c5   :  { %v675_v32 = vadd.f32 %v656_v28, %v244_v26  ;;  %v1988_v33 = vadd.f32 %v670_v29, %v258_v25  ;;  %v608_v25 = vpop.f32.mrf.mxu1  ;;  %v295_v28 = vadd.f32 %v294_v58, %v1981_v14  ;;  %v281_v29 = vadd.f32 %v1843_v17, %v1917_v55 }
 0x1c6   :  { %v2034_v26 = vadd.f32 %v608_v25, %v223_v11 }
 0x1c7   :  { %704 = vst [vmem:[#allocation10 + $0x10] sm:$0xff] %v675_v32  ;;  %v1993_v35 = vsel %vm617_vm0, %v1988_v33, -1e+30 }
 0x1c8   :  { %681 = vmax.xlane.f32.xlu1 %v1993_v35 }
 0x1cc   :  { %v658_v41 = vpop.f32.mrf.mxu2  ;;  %v672_v43 = vpop.f32.mrf.mxu3 }
 0x1cd   :  { %v677_v44 = vadd.f32 %v658_v41, %v246_v40  ;;  %v1998_v48 = vadd.f32 %v672_v43, %v260_v36 }
 0x1cf   :  { %705 = vst [vmem:[#allocation10 + $0x18] sm:$0xff] %v677_v44  ;;  %v709_v52 = vpack.c.bf16 %v677_v44, %v675_v32  ;;  %v2003_v56 = vsel %vm617_vm0, %v1998_v48, -1e+30  ;;  %v297_v44 = vadd.f32 %v296_v60, %v1981_v14 }
 0x1d0   :  { %683 = vmax.xlane.f32.xlu1 %v2003_v56 }
 0x1d1   :  { %718 = vmatmul.bf16.vlgmr.msrb.gmra.mxu0 %v709_v52  ;;  %732 = vmatmul.bf16.vlgmr.msrb.gmra.mxu1 %v709_v52 }
 0x1d2   :  { %962 = vmatpush.bf16.msrb.mxu0 %v1700_v37  ;;  %976 = vmatpush.bf16.msrb.mxu1 %v1847_v20 }
 0x1d6   :  { %963 = vmatpush.bf16.msrb.mxu0 %v1710_v45  ;;  %977 = vmatpush.bf16.msrb.mxu1 %v1853_v27 }
 0x1da   :  { %964 = vmatpush.bf16.msrb.mxu0 %v1720_v53  ;;  %978 = vmatpush.bf16.msrb.mxu1 %v1861_v31 }
 0x1de   :  { %965 = vmatpush.bf16.msrb.mxu0 %v1727_v59  ;;  %979 = vmatpush.bf16.msrb.mxu1 %v1867_v34 }
 0x1e2   :  { %966 = vmatpush.bf16.msrb.mxu0 %v1734_v1  ;;  %980 = vmatpush.bf16.msrb.mxu1 %v1874_v39 }
 0x1e6   :  { %967 = vmatpush.bf16.msrb.mxu0 %v1741_v7  ;;  %981 = vmatpush.bf16.msrb.mxu1 %v1880_v42 }
 0x1ea   :  { %968 = vmatpush.bf16.msrb.mxu0 %v1746_v13  ;;  %982 = vmatpush.bf16.msrb.mxu1 %v1887_v47 }
 0x1ee   :  { %969 = vmatpush.bf16.msrb.mxu0 %v1753_v18  ;;  %983 = vmatpush.bf16.msrb.mxu1 %v1892_v50 }
 0x24e   :  { %v719_v32 = vpop.f32.mrf.mxu0  ;;  %v733_v36 = vpop.f32.mrf.mxu1 }
 0x24f   :  { %v738_v40 = vadd.f32 %v719_v32, %v281_v29  ;;  %v2039_v41 = vadd.f32 %v733_v36, %v295_v28  ;;  %v371_v28 = vadd.f32 %v2024_v62, %v1981_v14  ;;  %v406_v62 = vadd.f32 %v1964_v16, %v1981_v14 }
 0x250   :  { %v394_v16 = vadd.f32 %v1970_v22, %v1917_v55 }
 0x251   :  { %767 = vst [vmem:[#allocation10 + $0x20] sm:$0xff] %v738_v40  ;;  %v2044_v43 = vsel %vm617_vm0, %v2039_v41, -1e+30 }
 0x252   :  { %744 = vmax.xlane.f32.xlu2 %v2044_v43 }
 0x256   :  { %v721_v52 = vpop.f32.mrf.mxu0  ;;  %v735_v17 = vpop.f32.mrf.mxu1 }
 0x257   :  { %v740_v57 = vadd.f32 %v721_v52, %v283_v49  ;;  %v2050_v58 = vadd.f32 %v735_v17, %v297_v44 }
 0x259   :  { %768 = vst [vmem:[#allocation10 + $0x28] sm:$0xff] %v740_v57  ;;  %v772_v2 = vpack.c.bf16 %v740_v57, %v738_v40  ;;  %v2055_v4 = vsel %vm617_vm0, %v2050_v58, -1e+30 }
 0x25a   :  { %746 = vmax.xlane.f32.xlu2 %v2055_v4 }
 0x25b   :  { %781 = vmatmul.bf16.vlgmr.msrb.gmra.mxu2 %v772_v2  ;;  %795 = vmatmul.bf16.vlgmr.msrb.gmra.mxu3 %v772_v2 }
 0x25c   :  { %1025 = vmatpush.bf16.msrb.mxu2 %v1700_v37  ;;  %1039 = vmatpush.bf16.msrb.mxu3 %v1847_v20  ;;  %v2077_v37 = vsel %vm617_vm0, %v2031_v6, -1e+30 }
 0x25d   :  { %620 = vmax.xlane.f32.xlu0 %v2077_v37 }
 0x260   :  { %1026 = vmatpush.bf16.msrb.mxu2 %v1710_v45  ;;  %1040 = vmatpush.bf16.msrb.mxu3 %v1853_v27  ;;  %v2083_v45 = vsel %vm617_vm0, %v2034_v26, -1e+30  ;;  %v334_v27 = vadd.f32 %v1960_v12, %v1981_v14 }
 0x264   :  { %1027 = vmatpush.bf16.msrb.mxu2 %v1720_v53  ;;  %1041 = vmatpush.bf16.msrb.mxu3 %v1861_v31  ;;  %v332_v53 = vadd.f32 %v1956_v9, %v1981_v14  ;;  %v369_v9 = vadd.f32 %v2022_v61, %v1981_v14  ;;  %v357_v61 = vadd.f32 %v1885_v46, %v1917_v55 }
 0x265   :  { %622 = vmax.xlane.f32.xlu0 %v2083_v45  ;;  %v392_v46 = vadd.f32 %v1966_v19, %v1917_v55 }
 0x268   :  { %1028 = vmatpush.bf16.msrb.mxu2 %v1727_v59  ;;  %1042 = vmatpush.bf16.msrb.mxu3 %v1867_v34  ;;  %v318_v59 = vadd.f32 %v1958_v10, %v1917_v55  ;;  %v355_v10 = vadd.f32 %v1871_v38, %v1917_v55 }
 0x26c   :  { %1029 = vmatpush.bf16.msrb.mxu2 %v1734_v1  ;;  %1043 = vmatpush.bf16.msrb.mxu3 %v1874_v39 }
 0x270   :  { %1030 = vmatpush.bf16.msrb.mxu2 %v1741_v7  ;;  %1044 = vmatpush.bf16.msrb.mxu3 %v1880_v42 }
 0x274   :  { %1031 = vmatpush.bf16.msrb.mxu2 %v1746_v13  ;;  %1045 = vmatpush.bf16.msrb.mxu3 %v1887_v47 }
 0x278   :  { %1032 = vmatpush.bf16.msrb.mxu2 %v1753_v18  ;;  %1046 = vmatpush.bf16.msrb.mxu3 %v1892_v50 }
 0x2d0   :  { %v2160_v22 = vpop.xlane.xlu0 %620 }
 0x2de   :  { %v782_v1 = vpop.f32.mrf.mxu2  ;;  %v796_v7 = vpop.f32.mrf.mxu3 }
 0x2df   :  { %v801_v13 = vadd.f32 %v782_v1, %v318_v59  ;;  %v2090_v18 = vadd.f32 %v796_v7, %v332_v53  ;;  %v408_v53 = vadd.f32 %v1968_v21, %v1981_v14  ;;  %v443_v21 = vadd.f32 %v2026_v63, %v1981_v14 }
 0x2e0   :  { %v445_v63 = vadd.f32 %v2028_v0, %v1981_v14 }
 0x2e1   :  { %830 = vst [vmem:[#allocation10 + $0x30] sm:$0xff] %v801_v13  ;;  %v2095_v20 = vsel %vm617_vm0, %v2090_v18, -1e+30 }
 0x2e2   :  { %807 = vmax.xlane.f32.xlu0 %v2095_v20 }
 0x2e6   :  { %v784_v31 = vpop.f32.mrf.mxu2  ;;  %v798_v34 = vpop.f32.mrf.mxu3 }
 0x2e7   :  { %v803_v39 = vadd.f32 %v784_v31, %v320_v30  ;;  %v2102_v42 = vadd.f32 %v798_v34, %v334_v27  ;;  %v429_v30 = vadd.f32 %v1899_v51, %v1917_v55  ;;  %v2164_v31 = vpop.xlane.xlu1 %681  ;;  %v431_v51 = vadd.f32 %v1914_v54, %v1917_v55 }
 0x2e9   :  { %831 = vst [vmem:[#allocation10 + $0x38] sm:$0xff] %v803_v39  ;;  %v835_v47 = vpack.c.bf16 %v803_v39, %v801_v13  ;;  %v2107_v50 = vsel %vm617_vm0, %v2102_v42, -1e+30 }
 0x2ea   :  { %809 = vmax.xlane.f32.xlu1 %v2107_v50 }
 0x2eb   :  { %844 = vmatmul.bf16.vlgmr.msra.gmra.mxu0 %v835_v47  ;;  %858 = vmatmul.bf16.vlgmr.msra.gmra.mxu1 %v835_v47 }
 0x368   :  { %v845_v12 = vpop.f32.mrf.mxu0  ;;  %v859_v15 = vpop.f32.mrf.mxu1 }
 0x369   :  { %v864_v60 = vadd.f32 %v845_v12, %v355_v10  ;;  %v2114_v11 = vadd.f32 %v859_v15, %v369_v9  ;;  %v624_v12 = vsub.f32 %v2077_v37, %v2160_v22  ;;  %v2177_v15 = vpop.xlane.xlu0 %622 }
 0x36b   :  { %893 = vst [vmem:[#allocation10 + $0x40] sm:$0xff] %v864_v60  ;;  %v2119_v25 = vsel %vm617_vm0, %v2114_v11, -1e+30 }
 0x36c   :  { %870 = vmax.xlane.f32.xlu2 %v2119_v25 }
 0x370   :  { %v847_v38 = vpop.f32.mrf.mxu0  ;;  %v861_v29 = vpop.f32.mrf.mxu1 }
 0x371   :  { %v866_v32 = vadd.f32 %v847_v38, %v357_v61  ;;  %v2126_v36 = vadd.f32 %v861_v29, %v371_v28  ;;  %v626_v61 = vmul.f32 1.442695, %v624_v12  ;;  %v466_v12 = vadd.f32 %v1974_v3, %v1917_v55 }
 0x372   :  { %v685_v3 = vsub.f32 %v1993_v35, %v2164_v31 }
 0x373   :  { %894 = vst [vmem:[#allocation10 + $0x48] sm:$0xff] %v866_v32  ;;  %v898_v40 = vpack.c.bf16 %v866_v32, %v864_v60  ;;  %v2131_v44 = vsel %vm617_vm0, %v2126_v36, -1e+30  ;;  %v2181_v32 = vpop.xlane.xlu1 %683  ;;  %1336 = vpow2.f32 %v626_v61 }
 0x374   :  { %872 = vmax.xlane.f32.xlu0 %v2131_v44  ;;  %v686_v54 = vsub.f32 %v2003_v56, %v2181_v32  ;;  %v687_v35 = vmul.f32 1.442695, %v685_v3 }
 0x375   :  { %907 = vmatmul.bf16.vlgmr.msra.gmra.mxu2 %v898_v40  ;;  %921 = vmatmul.bf16.vlgmr.msra.gmra.mxu3 %v898_v40 }
 0x376   :  { %v689_v37 = vmul.f32 1.442695, %v686_v54 }
 0x378   :  { %1338 = vpow2.f32 %v689_v37 }
 0x3f8   :  { %v908_v49 = vpop.f32.mrf.mxu2  ;;  %v922_v52 = vpop.f32.mrf.mxu3 }
 0x3f9   :  { %v927_v17 = vadd.f32 %v908_v49, %v392_v46  ;;  %v2138_v57 = vadd.f32 %v922_v52, %v406_v62  ;;  %v2191_v62 = vpop.xlane.xlu0 %807  ;;  %v1337_v46 = vpop.eup %1336 }
 0x3fa   :  { %v811_v49 = vsub.f32 %v2095_v20, %v2191_v62 }
 0x3fb   :  { %956 = vst [vmem:[#allocation10 + $0x50] sm:$0xff] %v927_v17  ;;  %v2143_v2 = vsel %vm617_vm0, %v2138_v57, -1e+30 }
 0x3fc   :  { %933 = vmax.xlane.f32.xlu1 %v2143_v2  ;;  %v813_v52 = vmul.f32 1.442695, %v811_v49  ;;  %v468_v49 = vadd.f32 %v1978_v8, %v1917_v55 }
 0x3fe   :  { %1340 = vpow2.f32 %v813_v52  ;;  %v482_v52 = vadd.f32 %v1976_v5, %v1981_v14 }
 0x400   :  { %v910_v19 = vpop.f32.mrf.mxu2  ;;  %v924_v59 = vpop.f32.mrf.mxu3 }
 0x401   :  { %v929_v1 = vadd.f32 %v910_v19, %v394_v16  ;;  %v2150_v7 = vadd.f32 %v924_v59, %v408_v53  ;;  %v1339_v53 = vpop.eup %1338 }
 0x403   :  { %957 = vst [vmem:[#allocation10 + $0x58] sm:$0xff] %v929_v1  ;;  %v961_v13 = vpack.c.bf16 %v929_v1, %v927_v17  ;;  %v2155_v27 = vsel %vm617_vm0, %v2150_v7, -1e+30  ;;  %v2195_v17 = vpop.xlane.xlu0 %872  ;;  %v2199_v1 = vpop.xlane.xlu1 %809 }
 0x404   :  { %935 = vmax.xlane.f32.xlu2 %v2155_v27  ;;  %v875_v56 = vsub.f32 %v2131_v44, %v2195_v17  ;;  %v1341_v19 = vpop.eup %1340 }
 0x405   :  { %970 = vmatmul.bf16.vlgmr.msrb.gmra.mxu0 %v961_v13  ;;  %984 = vmatmul.bf16.vlgmr.msrb.gmra.mxu1 %v961_v13 }
 0x406   :  { %v878_v16 = vmul.f32 1.442695, %v875_v56 }
 0x408   :  { %1342 = vpow2.f32 %v878_v16 }
 0x40e   :  { %v1343_v59 = vpop.eup %1342 }
 0x46f   :  { %v2201_v13 = vpop.xlane.xlu1 %933 }
 0x482   :  { %v971_v34 = vpop.f32.mrf.mxu0  ;;  %v985_v39 = vpop.f32.mrf.mxu1 }
 0x483   :  { %v990_v47 = vadd.f32 %v971_v34, %v429_v30  ;;  %v2166_v9 = vadd.f32 %v985_v39, %v443_v21 }
 0x485   :  { %1019 = vst [vmem:[#allocation10 + $0x60] sm:$0xff] %v990_v47  ;;  %v994_v10 = vsel %vm617_vm0, %v2166_v9, -1e+30 }
 0x486   :  { %996 = vmax.xlane.f32.xlu0 %v994_v10 }
 0x48a   :  { %v973_v60 = vpop.f32.mrf.mxu0  ;;  %v987_v28 = vpop.f32.mrf.mxu1 }
 0x48b   :  { %v992_v38 = vadd.f32 %v973_v60, %v431_v51  ;;  %v2179_v29 = vadd.f32 %v987_v28, %v445_v63  ;;  %v480_v51 = vadd.f32 %v1972_v24, %v1981_v14  ;;  %v2214_v60 = vpop.xlane.xlu2 %744  ;;  %v812_v14 = vsub.f32 %v2107_v50, %v2199_v1 }
 0x48d   :  { %1020 = vst [vmem:[#allocation10 + $0x68] sm:$0xff] %v992_v38  ;;  %v1024_v40 = vpack.c.bf16 %v992_v38, %v990_v47  ;;  %v2186_v0 = vsel %vm617_vm0, %v2179_v29, -1e+30  ;;  %v625_v47 = vsub.f32 %v2083_v45, %v2177_v15 }
 0x48e   :  { %998 = vmax.xlane.f32.xlu1 %v2186_v0 }
 0x48f   :  { %1033 = vmatmul.bf16.vlgmr.msrb.gmra.mxu2 %v1024_v40  ;;  %1047 = vmatmul.bf16.vlgmr.msrb.gmra.mxu3 %v1024_v40  ;;  %v628_v54 = vmul.f32 1.442695, %v625_v47 }
 0x496   :  { %630 = vadd.xlane.f32.xlu1 %v1337_v46 }
 0x49e   :  { %693 = vadd.xlane.f32.xlu1 %v1339_v53  ;;  %v700_v53 = vsub.f32 %v1998_v48, %v2181_v32  ;;  %v825_v32 = vsub.f32 %v2090_v18, %v2191_v62  ;;  %v937_v18 = vsub.f32 %v2143_v2, %v2201_v13  ;;  %v889_v62 = vsub.f32 %v2126_v36, %v2195_v17 }
 0x4a6   :  { %817 = vadd.xlane.f32.xlu1 %v1341_v19 }
 0x4ae   :  { %882 = vadd.xlane.f32.xlu1 %v1343_v59 }
 0x4f9   :  { %v2203_v20 = vpop.xlane.xlu0 %996 }
 0x4fa   :  { %v1000_v21 = vsub.f32 %v994_v10, %v2203_v20  ;;  %v638_v10 = vsub.f32 %v2031_v6, %v2160_v22  ;;  %v748_v6 = vsub.f32 %v2044_v43, %v2214_v60 }
 0x4fc   :  { %v1002_v30 = vmul.f32 1.442695, %v1000_v21  ;;  %v750_v21 = vmul.f32 1.442695, %v748_v6 }
 0x4fe   :  { %1344 = vpow2.f32 %v1002_v30  ;;  %v2236_v30 = vpop.xlane.xlu2 %746 }
 0x4ff   :  { %v749_v8 = vsub.f32 %v2055_v4, %v2236_v30 }
 0x501   :  { %v2206_v34 = vpop.xlane.xlu1 %998 }
 0x502   :  { %v1001_v2 = vsub.f32 %v2186_v0, %v2206_v34 }
 0x504   :  { %v1345_v39 = vpop.eup %1344  ;;  %v1004_v17 = vmul.f32 1.442695, %v1001_v2 }
 0x505   :  { %1006 = vadd.xlane.f32.xlu1 %v1345_v39 }
 0x509   :  { %v631_v44 = vpop.xlane.xlu1 %630 }
 0x50a   :  { %1346 = vlog2.f32 %v631_v44 }
 0x510   :  { %v1347_v63 = vpop.eup %1346 }
 0x511   :  { %v635_v28 = vmul.f32 0.6931472, %v1347_v63  ;;  %v694_v61 = vpop.xlane.xlu1 %693  ;;  %v752_v63 = vmul.f32 1.442695, %v749_v8 }
 0x512   :  { %1348 = vlog2.f32 %v694_v61  ;;  %v1034_v38 = vpop.f32.mrf.mxu2  ;;  %v1048_v40 = vpop.f32.mrf.mxu3 }
 0x513   :  { %v640_v37 = vsub.f32 %v638_v10, %v635_v28  ;;  %v1053_v45 = vadd.f32 %v1034_v38, %v466_v12  ;;  %v2218_v46 = vadd.f32 %v1048_v40, %v480_v51  ;;  %1350 = vpow2.f32 %v628_v54  ;;  %v2252_v51 = vpop.xlane.xlu2 %870 }
 0x514   :  { %v815_v12 = vmul.f32 1.442695, %v812_v14  ;;  %v874_v61 = vsub.f32 %v2119_v25, %v2252_v51  ;;  %v939_v54 = vmul.f32 1.442695, %v937_v18 }
 0x515   :  { %644 = vst [vmem:[#allocation11] sm:$0xff] %v640_v37  ;;  %v2223_v24 = vsel %vm617_vm0, %v2218_v46, -1e+30 }
 0x516   :  { %1082 = vst [vmem:[#allocation10 + $0x70] sm:$0xff] %v1053_v45  ;;  %1059 = vmax.xlane.f32.xlu2 %v2223_v24  ;;  %v876_v40 = vmul.f32 1.442695, %v874_v61 }
 0x518   :  { %v1349_v22 = vpop.eup %1348 }
 0x519   :  { %v698_v56 = vmul.f32 0.6931472, %v1349_v22  ;;  %v818_v16 = vpop.xlane.xlu1 %817  ;;  %v1351_v55 = vpop.eup %1350 }
 0x51a   :  { %1352 = vlog2.f32 %v818_v16  ;;  %v1036_v19 = vpop.f32.mrf.mxu2  ;;  %v1050_v59 = vpop.f32.mrf.mxu3  ;;  %v1014_v16 = vsub.f32 %v2166_v9, %v2203_v20  ;;  %v639_v20 = vsub.f32 %v2034_v26, %v2177_v15 }
 0x51b   :  { %v702_v43 = vsub.f32 %v700_v53, %v698_v56  ;;  %v1055_v39 = vadd.f32 %v1036_v19, %v468_v49  ;;  %v2238_v44 = vadd.f32 %v1050_v59, %v482_v52  ;;  %1354 = vpow2.f32 %v687_v35  ;;  %v2260_v37 = vpop.xlane.xlu2 %935 }
 0x51c   :  { %1356 = vpow2.f32 %v750_v21  ;;  %v938_v25 = vsub.f32 %v2155_v27, %v2260_v37 }
 0x51d   :  { %708 = vst [vmem:[#allocation11 + $0x18] sm:$0xff] %v702_v43  ;;  %v2243_v5 = vsel %vm617_vm0, %v2238_v44, -1e+30 }
 0x51e   :  { %1083 = vst [vmem:[#allocation10 + $0x78] sm:$0xff] %v1055_v39  ;;  %1061 = vmax.xlane.f32.xlu0 %v2243_v5  ;;  %632 = vadd.xlane.f32.xlu2 %v1351_v55  ;;  %v941_v36 = vmul.f32 1.442695, %v938_v25  ;;  %v951_v25 = vsub.f32 %v2138_v57, %v2201_v13  ;;  %v952_v57 = vsub.f32 %v2150_v7, %v2260_v37 }
 0x51f   :  { %1099 = dma.vmem_to_hbm [thread:$0]  %s1092_s19, 2048, %s1094_s22, [#allocation4], %s1555_s29, %s1555_s29, %s1556_s30  }
 0x520   :  { %v1353_v48 = vpop.eup %1352 }
 0x521   :  { %v822_v47 = vmul.f32 0.6931472, %v1353_v48  ;;  %v883_v23 = vpop.xlane.xlu1 %882  ;;  %v1355_v10 = vpop.eup %1354 }
 0x522   :  { %1358 = vlog2.f32 %v883_v23  ;;  %v1357_v28 = vpop.eup %1356 }
 0x523   :  { %v827_v4 = vsub.f32 %v825_v32, %v822_v47  ;;  %1360 = vpow2.f32 %v752_v63 }
 0x524   :  { %1362 = vpow2.f32 %v815_v12 }
 0x525   :  { %833 = vst [vmem:[#allocation11 + $0x30] sm:$0xff] %v827_v4  ;;  %1364 = vpow2.f32 %v876_v40 }
 0x526   :  { %691 = vadd.xlane.f32.xlu0 %v1355_v10  ;;  %754 = vadd.xlane.f32.xlu2 %v1357_v28  ;;  %1366 = vpow2.f32 %v939_v54  ;;  %v699_v10 = vsub.f32 %v1988_v33, %v2164_v31  ;;  %v763_v54 = vsub.f32 %v2050_v58, %v2236_v30 }
 0x527   :  { %1368 = vpow2.f32 %v941_v36  ;;  %v888_v36 = vsub.f32 %v2114_v11, %v2252_v51 }
 0x528   :  { %v1359_v50 = vpop.eup %1358  ;;  %1370 = vpow2.f32 %v1004_v17 }
 0x529   :  { %v887_v38 = vmul.f32 0.6931472, %v1359_v50  ;;  %v1361_v3 = vpop.eup %1360 }
 0x52a   :  { %v1363_v6 = vpop.eup %1362 }
 0x52b   :  { %v891_v45 = vsub.f32 %v889_v62, %v887_v38  ;;  %v1365_v22 = vpop.eup %1364  ;;  %v826_v38 = vsub.f32 %v2102_v42, %v2199_v1 }
 0x52c   :  { %v1367_v49 = vpop.eup %1366 }
 0x52d   :  { %897 = vst [vmem:[#allocation11 + $0x48] sm:$0xff] %v891_v45  ;;  %v1369_v52 = vpop.eup %1368 }
 0x52e   :  { %756 = vadd.xlane.f32.xlu0 %v1361_v3  ;;  %819 = vadd.xlane.f32.xlu2 %v1363_v6  ;;  %v1371_v53 = vpop.eup %1370 }
 0x536   :  { %880 = vadd.xlane.f32.xlu0 %v1365_v22  ;;  %943 = vadd.xlane.f32.xlu2 %v1367_v49 }
 0x53e   :  { %945 = vadd.xlane.f32.xlu0 %v1369_v52  ;;  %1008 = vadd.xlane.f32.xlu2 %v1371_v53  ;;  %v1015_v52 = vsub.f32 %v2179_v29, %v2206_v34 }
 0x578   :  { %v1007_v56 = vpop.xlane.xlu1 %1006 }
 0x579   :  { %1372 = vlog2.f32 %v1007_v56 }
 0x57f   :  { %v1373_v27 = vpop.eup %1372 }
 0x580   :  { %v1011_v35 = vmul.f32 0.6931472, %v1373_v27 }
 0x582   :  { %v1016_v0 = vsub.f32 %v1014_v16, %v1011_v35 }
 0x584   :  { %1022 = vst [vmem:[#allocation11 + $0x60] sm:$0xff] %v1016_v0 }
 0x589   :  { %v2268_v19 = vpop.xlane.xlu2 %1059 }
 0x58a   :  { %v1063_v59 = vsub.f32 %v2223_v24, %v2268_v19  ;;  %v1077_v16 = vsub.f32 %v2218_v46, %v2268_v19 }
 0x58c   :  { %v1065_v21 = vmul.f32 1.442695, %v1063_v59 }
 0x58e   :  { %1374 = vpow2.f32 %v1065_v21 }
 0x591   :  { %v633_v43 = vpop.xlane.xlu2 %632  ;;  %v2272_v39 = vpop.xlane.xlu0 %1061 }
 0x592   :  { %1376 = vlog2.f32 %v633_v43  ;;  %v1064_v55 = vsub.f32 %v2243_v5, %v2272_v39  ;;  %v762_v5 = vsub.f32 %v2039_v41, %v2214_v60  ;;  %v1078_v7 = vsub.f32 %v2238_v44, %v2272_v39 }
 0x594   :  { %v1375_v8 = vpop.eup %1374  ;;  %v1067_v14 = vmul.f32 1.442695, %v1064_v55 }
 0x595   :  { %1069 = vadd.xlane.f32.xlu0 %v1375_v8 }
 0x596   :  { %1378 = vpow2.f32 %v1067_v14 }
 0x598   :  { %v1377_v9 = vpop.eup %1376 }
 0x599   :  { %v637_v48 = vmul.f32 0.6931472, %v1377_v9  ;;  %v755_v32 = vpop.xlane.xlu2 %754  ;;  %v692_v24 = vpop.xlane.xlu0 %691 }
 0x59a   :  { %1380 = vlog2.f32 %v755_v32 }
 0x59b   :  { %v641_v47 = vsub.f32 %v639_v20, %v637_v48  ;;  %1382 = vlog2.f32 %v692_v24 }
 0x59c   :  { %v1379_v23 = vpop.eup %1378 }
 0x59d   :  { %645 = vst [vmem:[#allocation11 + $0x8] sm:$0xff] %v641_v47  ;;  %1071 = vadd.xlane.f32.xlu1 %v1379_v23 }
 0x5a0   :  { %v1381_v26 = vpop.eup %1380 }
 0x5a1   :  { %v1383_v15 = vpop.eup %1382  ;;  %v759_v63 = vmul.f32 0.6931472, %v1381_v26  ;;  %v820_v12 = vpop.xlane.xlu2 %819 }
 0x5a2   :  { %v757_v4 = vpop.xlane.xlu0 %756  ;;  %v696_v28 = vmul.f32 0.6931472, %v1383_v15  ;;  %1384 = vlog2.f32 %v820_v12 }
 0x5a3   :  { %v764_v61 = vsub.f32 %v762_v5, %v759_v63  ;;  %1386 = vlog2.f32 %v757_v4 }
 0x5a4   :  { %v701_v18 = vsub.f32 %v699_v10, %v696_v28 }
 0x5a5   :  { %770 = vst [vmem:[#allocation11 + $0x20] sm:$0xff] %v764_v61 }
 0x5a6   :  { %707 = vst [vmem:[#allocation11 + $0x10] sm:$0xff] %v701_v18 }
 0x5a8   :  { %v1385_v50 = vpop.eup %1384 }
 0x5a9   :  { %v1387_v62 = vpop.eup %1386  ;;  %v824_v40 = vmul.f32 0.6931472, %v1385_v50  ;;  %v944_v41 = vpop.xlane.xlu2 %943 }
 0x5aa   :  { %v881_v60 = vpop.xlane.xlu0 %880  ;;  %v761_v45 = vmul.f32 0.6931472, %v1387_v62  ;;  %1388 = vlog2.f32 %v944_v41 }
 0x5ab   :  { %v828_v33 = vsub.f32 %v826_v38, %v824_v40  ;;  %1390 = vlog2.f32 %v881_v60 }
 0x5ac   :  { %v765_v31 = vsub.f32 %v763_v54, %v761_v45 }
 0x5ad   :  { %834 = vst [vmem:[#allocation11 + $0x38] sm:$0xff] %v828_v33 }
 0x5ae   :  { %771 = vst [vmem:[#allocation11 + $0x28] sm:$0xff] %v765_v31 }
 0x5b0   :  { %v1389_v3 = vpop.eup %1388 }
 0x5b1   :  { %v1391_v6 = vpop.eup %1390  ;;  %v948_v2 = vmul.f32 0.6931472, %v1389_v3  ;;  %v1009_v42 = vpop.xlane.xlu2 %1008 }
 0x5b2   :  { %v946_v1 = vpop.xlane.xlu0 %945  ;;  %v885_v17 = vmul.f32 0.6931472, %v1391_v6  ;;  %1392 = vlog2.f32 %v1009_v42 }
 0x5b3   :  { %v953_v58 = vsub.f32 %v951_v25, %v948_v2  ;;  %1394 = vlog2.f32 %v946_v1 }
 0x5b4   :  { %v890_v30 = vsub.f32 %v888_v36, %v885_v17 }
 0x5b5   :  { %959 = vst [vmem:[#allocation11 + $0x50] sm:$0xff] %v953_v58 }
 0x5b6   :  { %896 = vst [vmem:[#allocation11 + $0x40] sm:$0xff] %v890_v30 }
 0x5b8   :  { %v1393_v22 = vpop.eup %1392 }
 0x5b9   :  { %v1395_v49 = vpop.eup %1394  ;;  %v1013_v53 = vmul.f32 0.6931472, %v1393_v22 }
 0x5ba   :  { %v950_v13 = vmul.f32 0.6931472, %v1395_v49 }
 0x5bb   :  { %v1017_v56 = vsub.f32 %v1015_v52, %v1013_v53 }
 0x5bc   :  { %v954_v27 = vsub.f32 %v952_v57, %v950_v13 }
 0x5bd   :  { %1023 = vst [vmem:[#allocation11 + $0x68] sm:$0xff] %v1017_v56 }
 0x5be   :  { %960 = vst [vmem:[#allocation11 + $0x58] sm:$0xff] %v954_v27 }
 0x608   :  { %v1070_v11 = vpop.xlane.xlu0 %1069 }
 0x609   :  { %1396 = vlog2.f32 %v1070_v11 }
 0x60f   :  { %v1397_v51 = vpop.eup %1396 }
 0x610   :  { %v1074_v35 = vmul.f32 0.6931472, %v1397_v51  ;;  %v1072_v0 = vpop.xlane.xlu1 %1071 }
 0x611   :  { %1398 = vlog2.f32 %v1072_v0 }
 0x612   :  { %v1079_v59 = vsub.f32 %v1077_v16, %v1074_v35 }
 0x614   :  { %1085 = vst [vmem:[#allocation11 + $0x70] sm:$0xff] %v1079_v59 }
 0x617   :  { %v1399_v29 = vpop.eup %1398 }
 0x618   :  { %v1076_v34 = vmul.f32 0.6931472, %v1399_v29 }
 0x61a   :  { %v1080_v37 = vsub.f32 %v1078_v7, %v1076_v34 }
 0x61c   :  { %1086 = vst [vmem:[#allocation11 + $0x78] sm:$0xff] %v1080_v37 }
 0x61d   :  { %1112 = dma.vmem_to_hbm [thread:$0]  %s1105_s23, 2048, %s1107_s26, [#allocation12], %s1555_s29, %s1555_s29, %s1556_s30  }
 0x61e   :  { %1550 = dma.done.wait [#allocation4], 2048  }
 0x61f   :  { %1551 = vsyncadd [#allocation4], 4294965248 }
 0x620   :  { %1552 = dma.done.wait [#allocation12], 2048  }
 0x621   :  { %1553 = vsyncadd [#allocation12], 4294965248 }
 0x622   :  { %1121 = vsyncpa [#allocation3], 1 }
 0x623   :  { %1122 = vsyncpa [#allocation6], 1 }
 0x624   :  { %1123 = vsyncpa [#allocation9], 1 }
 0x625   :  { %1124 = vsyncpa [#allocation4], 1 }
 0x626   :  { %1125 = vsyncpa [#allocation12], 1 }

</bundles_post_ra>
